<compile_context>
chip_gen: v7x
topology: tpu7x:2x2x1
jax: 0.10.0
libtpu: 0.0.40
codegen_flags: <defaults>
</compile_context>

<pallas_src>
import functools
import math

import jax
import jax.numpy as jnp
from jax.experimental import pallas as pl
from jax.experimental.pallas import tpu as pltpu


# ----------------------------------------------------------------------------
# Fused kernel: BN1d -> embedding -> L x (MHA -> LN -> FFN -> LN)
# ----------------------------------------------------------------------------
def graph_transformer_kernel(
    x_ref, mask_bias_ref,
    bn_g_ref, bn_b_ref,
    w_emb_ref,
    w_qkv_ref, b_qkv_ref,
    w_ao_ref, b_ao_ref,
    ln1_g_ref, ln1_b_ref,
    w_ff1_ref, b_ff1_ref,
    w_ff2_ref, b_ff2_ref,
    ln2_g_ref, ln2_b_ref,
    o_ref,
    *, num_layers, num_heads,
):
    eps = 1e-5
    x = x_ref[...]
    n = x.shape[0]
    inv_n = 1.0 / n

    # ---- BatchNorm1d (training mode: biased batch statistics, one pass) ----
    s1 = jnp.sum(x, axis=0, keepdims=True)
    s2 = jnp.sum(x * x, axis=0, keepdims=True)
    mean = s1 * inv_n
    var = s2 * inv_n - mean * mean
    x = (x - mean) * jax.lax.rsqrt(var + eps)
    x = x * bn_g_ref[...] + bn_b_ref[...]

    # ---- Embedding: Linear(in_size, d_model, bias=False) ----
    h = jnp.dot(x, w_emb_ref[...], preferred_element_type=jnp.float32)

    d_model = h.shape[-1]
    head_dim = d_model // num_heads
    scale = 1.0 / math.sqrt(head_dim)
    mask_bias = mask_bias_ref[...]            # (1, N): 0 = keep, -1e9 = pad

    def layer_norm(y, g, b):
        mu = jnp.mean(y, axis=-1, keepdims=True)
        v = jnp.mean(y * y, axis=-1, keepdims=True) - mu * mu
        return (y - mu) * jax.lax.rsqrt(v + eps) * g + b

    # After unsqueeze(1) the encoder sees seq_len = N nodes, batch = 1, so
    # self-attention mixes the N rows; we keep the (N, d_model) layout.
    for l in range(num_layers):
        # ---------------- multi-head self-attention ----------------
        qkv = jnp.dot(h, w_qkv_ref[l],
                      preferred_element_type=jnp.float32) + b_qkv_ref[l]
        q = qkv[:, 0 * d_model:1 * d_model]
        k = qkv[:, 1 * d_model:2 * d_model]
        v = qkv[:, 2 * d_model:3 * d_model]

        head_outs = []
        for hh in range(num_heads):
            lo = hh * head_dim
            hi = lo + head_dim
            qh = q[:, lo:hi]
            kh = k[:, lo:hi]
            vh = v[:, lo:hi]
            # scores = qh @ kh^T  (contract last dims; no explicit transpose)
            scores = jax.lax.dot_general(
                qh, kh, (((1,), (1,)), ((), ())),
                preferred_element_type=jnp.float32) * scale
            scores = scores + mask_bias               # src_key_padding_mask
            m = jnp.max(scores, axis=-1, keepdims=True)
            p = jnp.exp(scores - m)
            p = p / jnp.sum(p, axis=-1, keepdims=True)
            head_outs.append(
                jnp.dot(p, vh, preferred_element_type=jnp.float32))
        attn = jnp.concatenate(head_outs, axis=-1)
        attn = jnp.dot(attn, w_ao_ref[l],
                       preferred_element_type=jnp.float32) + b_ao_ref[l]

        # residual + LayerNorm (post-LN; dropout = identity)
        h = layer_norm(h + attn, ln1_g_ref[l], ln1_b_ref[l])

        # ---------------- feed-forward ----------------
        ff = jnp.dot(h, w_ff1_ref[l],
                     preferred_element_type=jnp.float32) + b_ff1_ref[l]
        ff = jnp.maximum(ff, 0.0)
        ff = jnp.dot(ff, w_ff2_ref[l],
                     preferred_element_type=jnp.float32) + b_ff2_ref[l]
        h = layer_norm(h + ff, ln2_g_ref[l], ln2_b_ref[l])

    o_ref[...] = h.astype(o_ref.dtype)


# ----------------------------------------------------------------------------
# Wrapper: single grid-less pallas_call, whole arrays resident in VMEM
# ----------------------------------------------------------------------------
def graph_transformer_forward(params, x, masks):
    n = x.shape[0]
    d_model = params["w_emb"].shape[1]
    num_layers = params["w_qkv"].shape[0]
    num_heads = params["num_heads"]

    # key_padding_mask (True = pad) -> additive bias row for the scores.
    mask_bias = jnp.where(masks, -1e9, 0.0).astype(jnp.float32)   # (1, N)

    vmem = pl.BlockSpec(memory_space=pltpu.MemorySpace.VMEM)
    args = (
        x, mask_bias,
        params["bn_g"], params["bn_b"],
        params["w_emb"],
        params["w_qkv"], params["b_qkv"],
        params["w_ao"], params["b_ao"],
        params["ln1_g"], params["ln1_b"],
        params["w_ff1"], params["b_ff1"],
        params["w_ff2"], params["b_ff2"],
        params["ln2_g"], params["ln2_b"],
    )
    kernel = functools.partial(
        graph_transformer_kernel, num_layers=num_layers, num_heads=num_heads)
    return pl.pallas_call(
        kernel,
        out_shape=jax.ShapeDtypeStruct((n, d_model), jnp.float32),
        in_specs=[vmem] * len(args),
        out_specs=vmem,
    )(*args)


# ----------------------------------------------------------------------------
# Parameter construction (weights pre-transposed to (in, out); per-layer
# params stacked along a leading layer axis)
# ----------------------------------------------------------------------------
def init_params(key, in_size, d_model, num_heads, dim_feedforward, num_layers,
                init_std=0.02):
    ks = jax.random.split(key, 5)

    def nrm(k, shape):
        return init_std * jax.random.normal(k, shape, dtype=jnp.float32)

    return {
        "num_heads": num_heads,
        # BatchNorm1d(in_size): default affine init (gamma=1, beta=0)
        "bn_g": jnp.ones((1, in_size), jnp.float32),
        "bn_b": jnp.zeros((1, in_size), jnp.float32),
        # embedding: Linear(in_size, d_model, bias=False)
        "w_emb": nrm(ks[0], (in_size, d_model)),
        # per-layer MHA in_proj / out_proj
        "w_qkv": nrm(ks[1], (num_layers, d_model, 3 * d_model)),
        "b_qkv": jnp.zeros((num_layers, 1, 3 * d_model), jnp.float32),
        "w_ao": nrm(ks[2], (num_layers, d_model, d_model)),
        "b_ao": jnp.zeros((num_layers, 1, d_model), jnp.float32),
        # LayerNorms
        "ln1_g": jnp.ones((num_layers, 1, d_model), jnp.float32),
        "ln1_b": jnp.zeros((num_layers, 1, d_model), jnp.float32),
        "ln2_g": jnp.ones((num_layers, 1, d_model), jnp.float32),
        "ln2_b": jnp.zeros((num_layers, 1, d_model), jnp.float32),
        # FFN
        "w_ff1": nrm(ks[3], (num_layers, d_model, dim_feedforward)),
        "b_ff1": jnp.zeros((num_layers, 1, dim_feedforward), jnp.float32),
        "w_ff2": nrm(ks[4], (num_layers, dim_feedforward, d_model)),
        "b_ff2": jnp.zeros((num_layers, 1, d_model), jnp.float32),
    }


# ----------------------------------------------------------------------------
if __name__ == "__main__":
    key = jax.random.PRNGKey(0)

    # Small, lane-friendly shapes: d_model / dim_feedforward multiples of 128.
    n_nodes = 8            # sequence length (encoder batch dim is 1)
    in_size = 32
    d_model = 128
    num_heads = 4          # head_dim = 32
    dim_feedforward = 256
    num_layers = 2

    kx, kp = jax.random.split(key)
    x = jax.random.normal(kx, (n_nodes, in_size), dtype=jnp.float32)
    # src_key_padding_mask: (batch=1, seq=N); True = padded node.
    masks = jnp.array([[False, False, False, False, False, False, True, True]])

    params = init_params(kp, in_size, d_model, num_heads, dim_feedforward,
                         num_layers)

    out = graph_transformer_forward(params, x, masks)
    out = jax.block_until_ready(out)
    assert out.shape == (n_nodes, d_model)
    assert bool(jnp.all(jnp.isfinite(out)))
    print("KERNEL_OK")
</pallas_src>

<mosaic_0001>
module attributes {stable_mosaic.version = 11 : i64} {
  func.func @graph_transformer_kernel(%arg0: memref<8x32xf32, #tpu.memory_space<vmem>>, %arg1: memref<1x8xf32, #tpu.memory_space<vmem>>, %arg2: memref<1x32xf32, #tpu.memory_space<vmem>>, %arg3: memref<1x32xf32, #tpu.memory_space<vmem>>, %arg4: memref<32x128xf32, #tpu.memory_space<vmem>>, %arg5: memref<2x128x384xf32, #tpu.memory_space<vmem>>, %arg6: memref<2x1x384xf32, #tpu.memory_space<vmem>>, %arg7: memref<2x128x128xf32, #tpu.memory_space<vmem>>, %arg8: memref<2x1x128xf32, #tpu.memory_space<vmem>>, %arg9: memref<2x1x128xf32, #tpu.memory_space<vmem>>, %arg10: memref<2x1x128xf32, #tpu.memory_space<vmem>>, %arg11: memref<2x128x256xf32, #tpu.memory_space<vmem>>, %arg12: memref<2x1x256xf32, #tpu.memory_space<vmem>>, %arg13: memref<2x256x128xf32, #tpu.memory_space<vmem>>, %arg14: memref<2x1x128xf32, #tpu.memory_space<vmem>>, %arg15: memref<2x1x128xf32, #tpu.memory_space<vmem>>, %arg16: memref<2x1x128xf32, #tpu.memory_space<vmem>>, %arg17: memref<8x128xf32, #tpu.memory_space<vmem>>) attributes {dimension_semantics = [], scalar_prefetch = 0 : i64, scratch_operands = 0 : i64, tpu.core_type = #tpu.core_type<tc>} {
    %c0 = arith.constant 0 : index
    %c0_0 = arith.constant 0 : index
    %0 = vector.load %arg0[%c0, %c0_0] : memref<8x32xf32, #tpu.memory_space<vmem>>, vector<8x32xf32>
    %cst = arith.constant dense<0.000000e+00> : vector<32xf32>
    %1 = vector.multi_reduction <add>, %0, %cst [0] : vector<8x32xf32> to vector<32xf32>
    %2 = vector.shape_cast %1 : vector<32xf32> to vector<1x32xf32>
    %3 = arith.mulf %0, %0 : vector<8x32xf32>
    %cst_1 = arith.constant dense<0.000000e+00> : vector<32xf32>
    %4 = vector.multi_reduction <add>, %3, %cst_1 [0] : vector<8x32xf32> to vector<32xf32>
    %5 = vector.shape_cast %4 : vector<32xf32> to vector<1x32xf32>
    %cst_2 = arith.constant 1.250000e-01 : f32
    %6 = vector.broadcast %cst_2 : f32 to vector<1x32xf32>
    %7 = arith.mulf %2, %6 : vector<1x32xf32>
    %cst_3 = arith.constant 1.250000e-01 : f32
    %8 = vector.broadcast %cst_3 : f32 to vector<1x32xf32>
    %9 = arith.mulf %5, %8 : vector<1x32xf32>
    %10 = arith.mulf %7, %7 : vector<1x32xf32>
    %11 = arith.subf %9, %10 : vector<1x32xf32>
    %12 = vector.broadcast %7 : vector<1x32xf32> to vector<8x32xf32>
    %13 = arith.subf %0, %12 : vector<8x32xf32>
    %cst_4 = arith.constant 9.99999974E-6 : f32
    %14 = vector.broadcast %cst_4 : f32 to vector<1x32xf32>
    %15 = arith.addf %11, %14 : vector<1x32xf32>
    %16 = math.rsqrt %15 : vector<1x32xf32>
    %17 = vector.broadcast %16 : vector<1x32xf32> to vector<8x32xf32>
    %18 = arith.mulf %13, %17 : vector<8x32xf32>
    %c0_5 = arith.constant 0 : index
    %c0_6 = arith.constant 0 : index
    %19 = vector.load %arg2[%c0_5, %c0_6] : memref<1x32xf32, #tpu.memory_space<vmem>>, vector<1x32xf32>
    %20 = vector.broadcast %19 : vector<1x32xf32> to vector<8x32xf32>
    %21 = arith.mulf %18, %20 : vector<8x32xf32>
    %c0_7 = arith.constant 0 : index
    %c0_8 = arith.constant 0 : index
    %22 = vector.load %arg3[%c0_7, %c0_8] : memref<1x32xf32, #tpu.memory_space<vmem>>, vector<1x32xf32>
    %23 = vector.broadcast %22 : vector<1x32xf32> to vector<8x32xf32>
    %24 = arith.addf %21, %23 : vector<8x32xf32>
    %c0_9 = arith.constant 0 : index
    %c0_10 = arith.constant 0 : index
    %25 = vector.load %arg4[%c0_9, %c0_10] : memref<32x128xf32, #tpu.memory_space<vmem>>, vector<32x128xf32>
    %cst_11 = arith.constant dense<0.000000e+00> : vector<8x128xf32>
    %26 = tpu.matmul %24, %25, %cst_11 {dimension_numbers = #tpu.dot_dimension_numbers<[1], [0], [0], [1], [0, 0, 1, 1], [], []>} : vector<8x32xf32>, vector<32x128xf32>, vector<8x128xf32> -> vector<8x128xf32>
    %c0_12 = arith.constant 0 : index
    %c0_13 = arith.constant 0 : index
    %27 = vector.load %arg1[%c0_12, %c0_13] : memref<1x8xf32, #tpu.memory_space<vmem>>, vector<1x8xf32>
    %c0_14 = arith.constant 0 : index
    %c0_15 = arith.constant 0 : index
    %c0_16 = arith.constant 0 : index
    %28 = vector.load %arg5[%c0_14, %c0_15, %c0_16] : memref<2x128x384xf32, #tpu.memory_space<vmem>>, vector<1x128x384xf32>
    %29 = vector.shape_cast %28 : vector<1x128x384xf32> to vector<128x384xf32>
    %cst_17 = arith.constant dense<0.000000e+00> : vector<8x384xf32>
    %30 = tpu.matmul %26, %29, %cst_17 {dimension_numbers = #tpu.dot_dimension_numbers<[1], [0], [0], [1], [0, 0, 1, 1], [], []>} : vector<8x128xf32>, vector<128x384xf32>, vector<8x384xf32> -> vector<8x384xf32>
    %c0_18 = arith.constant 0 : index
    %c0_19 = arith.constant 0 : index
    %c0_20 = arith.constant 0 : index
    %31 = vector.load %arg6[%c0_18, %c0_19, %c0_20] : memref<2x1x384xf32, #tpu.memory_space<vmem>>, vector<1x1x384xf32>
    %32 = vector.shape_cast %31 : vector<1x1x384xf32> to vector<1x384xf32>
    %33 = vector.broadcast %32 : vector<1x384xf32> to vector<8x384xf32>
    %34 = arith.addf %30, %33 : vector<8x384xf32>
    %35 = vector.extract_strided_slice %34 {offsets = [0, 0], sizes = [8, 128], strides = [1, 1]} : vector<8x384xf32> to vector<8x128xf32>
    %36 = vector.extract_strided_slice %34 {offsets = [0, 128], sizes = [8, 128], strides = [1, 1]} : vector<8x384xf32> to vector<8x128xf32>
    %37 = vector.extract_strided_slice %34 {offsets = [0, 256], sizes = [8, 128], strides = [1, 1]} : vector<8x384xf32> to vector<8x128xf32>
    %38 = vector.extract_strided_slice %35 {offsets = [0, 0], sizes = [8, 32], strides = [1, 1]} : vector<8x128xf32> to vector<8x32xf32>
    %39 = vector.extract_strided_slice %36 {offsets = [0, 0], sizes = [8, 32], strides = [1, 1]} : vector<8x128xf32> to vector<8x32xf32>
    %40 = vector.extract_strided_slice %37 {offsets = [0, 0], sizes = [8, 32], strides = [1, 1]} : vector<8x128xf32> to vector<8x32xf32>
    %cst_21 = arith.constant dense<0.000000e+00> : vector<8x8xf32>
    %41 = tpu.matmul %38, %39, %cst_21 {dimension_numbers = #tpu.dot_dimension_numbers<[1], [1], [0], [0], [0, 0, 1, 0], [], []>} : vector<8x32xf32>, vector<8x32xf32>, vector<8x8xf32> -> vector<8x8xf32>
    %cst_22 = arith.constant 0.176776692 : f32
    %42 = vector.broadcast %cst_22 : f32 to vector<8x8xf32>
    %43 = arith.mulf %41, %42 : vector<8x8xf32>
    %44 = vector.broadcast %27 : vector<1x8xf32> to vector<8x8xf32>
    %45 = arith.addf %43, %44 : vector<8x8xf32>
    %cst_23 = arith.constant dense<0xFF800000> : vector<8xf32>
    %46 = vector.multi_reduction <maximumf>, %45, %cst_23 [1] : vector<8x8xf32> to vector<8xf32>
    %47 = vector.shape_cast %46 : vector<8xf32> to vector<8x1xf32>
    %48 = vector.broadcast %47 : vector<8x1xf32> to vector<8x8xf32>
    %49 = arith.subf %45, %48 : vector<8x8xf32>
    %50 = math.exp %49 : vector<8x8xf32>
    %cst_24 = arith.constant dense<0.000000e+00> : vector<8xf32>
    %51 = vector.multi_reduction <add>, %50, %cst_24 [1] : vector<8x8xf32> to vector<8xf32>
    %52 = vector.shape_cast %51 : vector<8xf32> to vector<8x1xf32>
    %53 = vector.broadcast %52 : vector<8x1xf32> to vector<8x8xf32>
    %54 = arith.divf %50, %53 : vector<8x8xf32>
    %cst_25 = arith.constant dense<0.000000e+00> : vector<8x32xf32>
    %55 = tpu.matmul %54, %40, %cst_25 {dimension_numbers = #tpu.dot_dimension_numbers<[1], [0], [0], [1], [0, 0, 1, 1], [], []>} : vector<8x8xf32>, vector<8x32xf32>, vector<8x32xf32> -> vector<8x32xf32>
    %56 = vector.extract_strided_slice %35 {offsets = [0, 32], sizes = [8, 32], strides = [1, 1]} : vector<8x128xf32> to vector<8x32xf32>
    %57 = vector.extract_strided_slice %36 {offsets = [0, 32], sizes = [8, 32], strides = [1, 1]} : vector<8x128xf32> to vector<8x32xf32>
    %58 = vector.extract_strided_slice %37 {offsets = [0, 32], sizes = [8, 32], strides = [1, 1]} : vector<8x128xf32> to vector<8x32xf32>
    %cst_26 = arith.constant dense<0.000000e+00> : vector<8x8xf32>
    %59 = tpu.matmul %56, %57, %cst_26 {dimension_numbers = #tpu.dot_dimension_numbers<[1], [1], [0], [0], [0, 0, 1, 0], [], []>} : vector<8x32xf32>, vector<8x32xf32>, vector<8x8xf32> -> vector<8x8xf32>
    %cst_27 = arith.constant 0.176776692 : f32
    %60 = vector.broadcast %cst_27 : f32 to vector<8x8xf32>
    %61 = arith.mulf %59, %60 : vector<8x8xf32>
    %62 = vector.broadcast %27 : vector<1x8xf32> to vector<8x8xf32>
    %63 = arith.addf %61, %62 : vector<8x8xf32>
    %cst_28 = arith.constant dense<0xFF800000> : vector<8xf32>
    %64 = vector.multi_reduction <maximumf>, %63, %cst_28 [1] : vector<8x8xf32> to vector<8xf32>
    %65 = vector.shape_cast %64 : vector<8xf32> to vector<8x1xf32>
    %66 = vector.broadcast %65 : vector<8x1xf32> to vector<8x8xf32>
    %67 = arith.subf %63, %66 : vector<8x8xf32>
    %68 = math.exp %67 : vector<8x8xf32>
    %cst_29 = arith.constant dense<0.000000e+00> : vector<8xf32>
    %69 = vector.multi_reduction <add>, %68, %cst_29 [1] : vector<8x8xf32> to vector<8xf32>
    %70 = vector.shape_cast %69 : vector<8xf32> to vector<8x1xf32>
    %71 = vector.broadcast %70 : vector<8x1xf32> to vector<8x8xf32>
    %72 = arith.divf %68, %71 : vector<8x8xf32>
    %cst_30 = arith.constant dense<0.000000e+00> : vector<8x32xf32>
    %73 = tpu.matmul %72, %58, %cst_30 {dimension_numbers = #tpu.dot_dimension_numbers<[1], [0], [0], [1], [0, 0, 1, 1], [], []>} : vector<8x8xf32>, vector<8x32xf32>, vector<8x32xf32> -> vector<8x32xf32>
    %74 = vector.extract_strided_slice %35 {offsets = [0, 64], sizes = [8, 32], strides = [1, 1]} : vector<8x128xf32> to vector<8x32xf32>
    %75 = vector.extract_strided_slice %36 {offsets = [0, 64], sizes = [8, 32], strides = [1, 1]} : vector<8x128xf32> to vector<8x32xf32>
    %76 = vector.extract_strided_slice %37 {offsets = [0, 64], sizes = [8, 32], strides = [1, 1]} : vector<8x128xf32> to vector<8x32xf32>
    %cst_31 = arith.constant dense<0.000000e+00> : vector<8x8xf32>
    %77 = tpu.matmul %74, %75, %cst_31 {dimension_numbers = #tpu.dot_dimension_numbers<[1], [1], [0], [0], [0, 0, 1, 0], [], []>} : vector<8x32xf32>, vector<8x32xf32>, vector<8x8xf32> -> vector<8x8xf32>
    %cst_32 = arith.constant 0.176776692 : f32
    %78 = vector.broadcast %cst_32 : f32 to vector<8x8xf32>
    %79 = arith.mulf %77, %78 : vector<8x8xf32>
    %80 = vector.broadcast %27 : vector<1x8xf32> to vector<8x8xf32>
    %81 = arith.addf %79, %80 : vector<8x8xf32>
    %cst_33 = arith.constant dense<0xFF800000> : vector<8xf32>
    %82 = vector.multi_reduction <maximumf>, %81, %cst_33 [1] : vector<8x8xf32> to vector<8xf32>
    %83 = vector.shape_cast %82 : vector<8xf32> to vector<8x1xf32>
    %84 = vector.broadcast %83 : vector<8x1xf32> to vector<8x8xf32>
    %85 = arith.subf %81, %84 : vector<8x8xf32>
    %86 = math.exp %85 : vector<8x8xf32>
    %cst_34 = arith.constant dense<0.000000e+00> : vector<8xf32>
    %87 = vector.multi_reduction <add>, %86, %cst_34 [1] : vector<8x8xf32> to vector<8xf32>
    %88 = vector.shape_cast %87 : vector<8xf32> to vector<8x1xf32>
    %89 = vector.broadcast %88 : vector<8x1xf32> to vector<8x8xf32>
    %90 = arith.divf %86, %89 : vector<8x8xf32>
    %cst_35 = arith.constant dense<0.000000e+00> : vector<8x32xf32>
    %91 = tpu.matmul %90, %76, %cst_35 {dimension_numbers = #tpu.dot_dimension_numbers<[1], [0], [0], [1], [0, 0, 1, 1], [], []>} : vector<8x8xf32>, vector<8x32xf32>, vector<8x32xf32> -> vector<8x32xf32>
    %92 = vector.extract_strided_slice %35 {offsets = [0, 96], sizes = [8, 32], strides = [1, 1]} : vector<8x128xf32> to vector<8x32xf32>
    %93 = vector.extract_strided_slice %36 {offsets = [0, 96], sizes = [8, 32], strides = [1, 1]} : vector<8x128xf32> to vector<8x32xf32>
    %94 = vector.extract_strided_slice %37 {offsets = [0, 96], sizes = [8, 32], strides = [1, 1]} : vector<8x128xf32> to vector<8x32xf32>
    %cst_36 = arith.constant dense<0.000000e+00> : vector<8x8xf32>
    %95 = tpu.matmul %92, %93, %cst_36 {dimension_numbers = #tpu.dot_dimension_numbers<[1], [1], [0], [0], [0, 0, 1, 0], [], []>} : vector<8x32xf32>, vector<8x32xf32>, vector<8x8xf32> -> vector<8x8xf32>
    %cst_37 = arith.constant 0.176776692 : f32
    %96 = vector.broadcast %cst_37 : f32 to vector<8x8xf32>
    %97 = arith.mulf %95, %96 : vector<8x8xf32>
    %98 = vector.broadcast %27 : vector<1x8xf32> to vector<8x8xf32>
    %99 = arith.addf %97, %98 : vector<8x8xf32>
    %cst_38 = arith.constant dense<0xFF800000> : vector<8xf32>
    %100 = vector.multi_reduction <maximumf>, %99, %cst_38 [1] : vector<8x8xf32> to vector<8xf32>
    %101 = vector.shape_cast %100 : vector<8xf32> to vector<8x1xf32>
    %102 = vector.broadcast %101 : vector<8x1xf32> to vector<8x8xf32>
    %103 = arith.subf %99, %102 : vector<8x8xf32>
    %104 = math.exp %103 : vector<8x8xf32>
    %cst_39 = arith.constant dense<0.000000e+00> : vector<8xf32>
    %105 = vector.multi_reduction <add>, %104, %cst_39 [1] : vector<8x8xf32> to vector<8xf32>
    %106 = vector.shape_cast %105 : vector<8xf32> to vector<8x1xf32>
    %107 = vector.broadcast %106 : vector<8x1xf32> to vector<8x8xf32>
    %108 = arith.divf %104, %107 : vector<8x8xf32>
    %cst_40 = arith.constant dense<0.000000e+00> : vector<8x32xf32>
    %109 = tpu.matmul %108, %94, %cst_40 {dimension_numbers = #tpu.dot_dimension_numbers<[1], [0], [0], [1], [0, 0, 1, 1], [], []>} : vector<8x8xf32>, vector<8x32xf32>, vector<8x32xf32> -> vector<8x32xf32>
    %110 = tpu.concatenate %55, %73, %91, %109 in 1 : vector<8x32xf32>, vector<8x32xf32>, vector<8x32xf32>, vector<8x32xf32> -> vector<8x128xf32>
    %c0_41 = arith.constant 0 : index
    %c0_42 = arith.constant 0 : index
    %c0_43 = arith.constant 0 : index
    %111 = vector.load %arg7[%c0_41, %c0_42, %c0_43] : memref<2x128x128xf32, #tpu.memory_space<vmem>>, vector<1x128x128xf32>
    %112 = vector.shape_cast %111 : vector<1x128x128xf32> to vector<128x128xf32>
    %cst_44 = arith.constant dense<0.000000e+00> : vector<8x128xf32>
    %113 = tpu.matmul %110, %112, %cst_44 {dimension_numbers = #tpu.dot_dimension_numbers<[1], [0], [0], [1], [0, 0, 1, 1], [], []>} : vector<8x128xf32>, vector<128x128xf32>, vector<8x128xf32> -> vector<8x128xf32>
    %c0_45 = arith.constant 0 : index
    %c0_46 = arith.constant 0 : index
    %c0_47 = arith.constant 0 : index
    %114 = vector.load %arg8[%c0_45, %c0_46, %c0_47] : memref<2x1x128xf32, #tpu.memory_space<vmem>>, vector<1x1x128xf32>
    %115 = vector.shape_cast %114 : vector<1x1x128xf32> to vector<1x128xf32>
    %116 = vector.broadcast %115 : vector<1x128xf32> to vector<8x128xf32>
    %117 = arith.addf %113, %116 : vector<8x128xf32>
    %118 = arith.addf %26, %117 : vector<8x128xf32>
    %c0_48 = arith.constant 0 : index
    %c0_49 = arith.constant 0 : index
    %c0_50 = arith.constant 0 : index
    %119 = vector.load %arg9[%c0_48, %c0_49, %c0_50] : memref<2x1x128xf32, #tpu.memory_space<vmem>>, vector<1x1x128xf32>
    %120 = vector.shape_cast %119 : vector<1x1x128xf32> to vector<1x128xf32>
    %c0_51 = arith.constant 0 : index
    %c0_52 = arith.constant 0 : index
    %c0_53 = arith.constant 0 : index
    %121 = vector.load %arg10[%c0_51, %c0_52, %c0_53] : memref<2x1x128xf32, #tpu.memory_space<vmem>>, vector<1x1x128xf32>
    %122 = vector.shape_cast %121 : vector<1x1x128xf32> to vector<1x128xf32>
    %cst_54 = arith.constant dense<0.000000e+00> : vector<8xf32>
    %123 = vector.multi_reduction <add>, %118, %cst_54 [1] : vector<8x128xf32> to vector<8xf32>
    %124 = vector.shape_cast %123 : vector<8xf32> to vector<8x1xf32>
    %cst_55 = arith.constant 1.280000e+02 : f32
    %125 = vector.broadcast %cst_55 : f32 to vector<8x1xf32>
    %126 = arith.divf %124, %125 : vector<8x1xf32>
    %127 = arith.mulf %118, %118 : vector<8x128xf32>
    %cst_56 = arith.constant dense<0.000000e+00> : vector<8xf32>
    %128 = vector.multi_reduction <add>, %127, %cst_56 [1] : vector<8x128xf32> to vector<8xf32>
    %129 = vector.shape_cast %128 : vector<8xf32> to vector<8x1xf32>
    %cst_57 = arith.constant 1.280000e+02 : f32
    %130 = vector.broadcast %cst_57 : f32 to vector<8x1xf32>
    %131 = arith.divf %129, %130 : vector<8x1xf32>
    %132 = arith.mulf %126, %126 : vector<8x1xf32>
    %133 = arith.subf %131, %132 : vector<8x1xf32>
    %134 = vector.broadcast %126 : vector<8x1xf32> to vector<8x128xf32>
    %135 = arith.subf %118, %134 : vector<8x128xf32>
    %cst_58 = arith.constant 9.99999974E-6 : f32
    %136 = vector.broadcast %cst_58 : f32 to vector<8x1xf32>
    %137 = arith.addf %133, %136 : vector<8x1xf32>
    %138 = math.rsqrt %137 : vector<8x1xf32>
    %139 = vector.broadcast %138 : vector<8x1xf32> to vector<8x128xf32>
    %140 = arith.mulf %135, %139 : vector<8x128xf32>
    %141 = vector.broadcast %120 : vector<1x128xf32> to vector<8x128xf32>
    %142 = arith.mulf %140, %141 : vector<8x128xf32>
    %143 = vector.broadcast %122 : vector<1x128xf32> to vector<8x128xf32>
    %144 = arith.addf %142, %143 : vector<8x128xf32>
    %c0_59 = arith.constant 0 : index
    %c0_60 = arith.constant 0 : index
    %c0_61 = arith.constant 0 : index
    %145 = vector.load %arg11[%c0_59, %c0_60, %c0_61] : memref<2x128x256xf32, #tpu.memory_space<vmem>>, vector<1x128x256xf32>
    %146 = vector.shape_cast %145 : vector<1x128x256xf32> to vector<128x256xf32>
    %cst_62 = arith.constant dense<0.000000e+00> : vector<8x256xf32>
    %147 = tpu.matmul %144, %146, %cst_62 {dimension_numbers = #tpu.dot_dimension_numbers<[1], [0], [0], [1], [0, 0, 1, 1], [], []>} : vector<8x128xf32>, vector<128x256xf32>, vector<8x256xf32> -> vector<8x256xf32>
    %c0_63 = arith.constant 0 : index
    %c0_64 = arith.constant 0 : index
    %c0_65 = arith.constant 0 : index
    %148 = vector.load %arg12[%c0_63, %c0_64, %c0_65] : memref<2x1x256xf32, #tpu.memory_space<vmem>>, vector<1x1x256xf32>
    %149 = vector.shape_cast %148 : vector<1x1x256xf32> to vector<1x256xf32>
    %150 = vector.broadcast %149 : vector<1x256xf32> to vector<8x256xf32>
    %151 = arith.addf %147, %150 : vector<8x256xf32>
    %cst_66 = arith.constant 0.000000e+00 : f32
    %152 = vector.broadcast %cst_66 : f32 to vector<8x256xf32>
    %153 = arith.maximumf %151, %152 : vector<8x256xf32>
    %c0_67 = arith.constant 0 : index
    %c0_68 = arith.constant 0 : index
    %c0_69 = arith.constant 0 : index
    %154 = vector.load %arg13[%c0_67, %c0_68, %c0_69] : memref<2x256x128xf32, #tpu.memory_space<vmem>>, vector<1x256x128xf32>
    %155 = vector.shape_cast %154 : vector<1x256x128xf32> to vector<256x128xf32>
    %cst_70 = arith.constant dense<0.000000e+00> : vector<8x128xf32>
    %156 = tpu.matmul %153, %155, %cst_70 {dimension_numbers = #tpu.dot_dimension_numbers<[1], [0], [0], [1], [0, 0, 1, 1], [], []>} : vector<8x256xf32>, vector<256x128xf32>, vector<8x128xf32> -> vector<8x128xf32>
    %c0_71 = arith.constant 0 : index
    %c0_72 = arith.constant 0 : index
    %c0_73 = arith.constant 0 : index
    %157 = vector.load %arg14[%c0_71, %c0_72, %c0_73] : memref<2x1x128xf32, #tpu.memory_space<vmem>>, vector<1x1x128xf32>
    %158 = vector.shape_cast %157 : vector<1x1x128xf32> to vector<1x128xf32>
    %159 = vector.broadcast %158 : vector<1x128xf32> to vector<8x128xf32>
    %160 = arith.addf %156, %159 : vector<8x128xf32>
    %161 = arith.addf %144, %160 : vector<8x128xf32>
    %c0_74 = arith.constant 0 : index
    %c0_75 = arith.constant 0 : index
    %c0_76 = arith.constant 0 : index
    %162 = vector.load %arg15[%c0_74, %c0_75, %c0_76] : memref<2x1x128xf32, #tpu.memory_space<vmem>>, vector<1x1x128xf32>
    %163 = vector.shape_cast %162 : vector<1x1x128xf32> to vector<1x128xf32>
    %c0_77 = arith.constant 0 : index
    %c0_78 = arith.constant 0 : index
    %c0_79 = arith.constant 0 : index
    %164 = vector.load %arg16[%c0_77, %c0_78, %c0_79] : memref<2x1x128xf32, #tpu.memory_space<vmem>>, vector<1x1x128xf32>
    %165 = vector.shape_cast %164 : vector<1x1x128xf32> to vector<1x128xf32>
    %cst_80 = arith.constant dense<0.000000e+00> : vector<8xf32>
    %166 = vector.multi_reduction <add>, %161, %cst_80 [1] : vector<8x128xf32> to vector<8xf32>
    %167 = vector.shape_cast %166 : vector<8xf32> to vector<8x1xf32>
    %cst_81 = arith.constant 1.280000e+02 : f32
    %168 = vector.broadcast %cst_81 : f32 to vector<8x1xf32>
    %169 = arith.divf %167, %168 : vector<8x1xf32>
    %170 = arith.mulf %161, %161 : vector<8x128xf32>
    %cst_82 = arith.constant dense<0.000000e+00> : vector<8xf32>
    %171 = vector.multi_reduction <add>, %170, %cst_82 [1] : vector<8x128xf32> to vector<8xf32>
    %172 = vector.shape_cast %171 : vector<8xf32> to vector<8x1xf32>
    %cst_83 = arith.constant 1.280000e+02 : f32
    %173 = vector.broadcast %cst_83 : f32 to vector<8x1xf32>
    %174 = arith.divf %172, %173 : vector<8x1xf32>
    %175 = arith.mulf %169, %169 : vector<8x1xf32>
    %176 = arith.subf %174, %175 : vector<8x1xf32>
    %177 = vector.broadcast %169 : vector<8x1xf32> to vector<8x128xf32>
    %178 = arith.subf %161, %177 : vector<8x128xf32>
    %cst_84 = arith.constant 9.99999974E-6 : f32
    %179 = vector.broadcast %cst_84 : f32 to vector<8x1xf32>
    %180 = arith.addf %176, %179 : vector<8x1xf32>
    %181 = math.rsqrt %180 : vector<8x1xf32>
    %182 = vector.broadcast %181 : vector<8x1xf32> to vector<8x128xf32>
    %183 = arith.mulf %178, %182 : vector<8x128xf32>
    %184 = vector.broadcast %163 : vector<1x128xf32> to vector<8x128xf32>
    %185 = arith.mulf %183, %184 : vector<8x128xf32>
    %186 = vector.broadcast %165 : vector<1x128xf32> to vector<8x128xf32>
    %187 = arith.addf %185, %186 : vector<8x128xf32>
    %c1 = arith.constant 1 : index
    %c0_85 = arith.constant 0 : index
    %c0_86 = arith.constant 0 : index
    %188 = vector.load %arg5[%c1, %c0_85, %c0_86] : memref<2x128x384xf32, #tpu.memory_space<vmem>>, vector<1x128x384xf32>
    %189 = vector.shape_cast %188 : vector<1x128x384xf32> to vector<128x384xf32>
    %cst_87 = arith.constant dense<0.000000e+00> : vector<8x384xf32>
    %190 = tpu.matmul %187, %189, %cst_87 {dimension_numbers = #tpu.dot_dimension_numbers<[1], [0], [0], [1], [0, 0, 1, 1], [], []>} : vector<8x128xf32>, vector<128x384xf32>, vector<8x384xf32> -> vector<8x384xf32>
    %c1_88 = arith.constant 1 : index
    %c0_89 = arith.constant 0 : index
    %c0_90 = arith.constant 0 : index
    %191 = vector.load %arg6[%c1_88, %c0_89, %c0_90] : memref<2x1x384xf32, #tpu.memory_space<vmem>>, vector<1x1x384xf32>
    %192 = vector.shape_cast %191 : vector<1x1x384xf32> to vector<1x384xf32>
    %193 = vector.broadcast %192 : vector<1x384xf32> to vector<8x384xf32>
    %194 = arith.addf %190, %193 : vector<8x384xf32>
    %195 = vector.extract_strided_slice %194 {offsets = [0, 0], sizes = [8, 128], strides = [1, 1]} : vector<8x384xf32> to vector<8x128xf32>
    %196 = vector.extract_strided_slice %194 {offsets = [0, 128], sizes = [8, 128], strides = [1, 1]} : vector<8x384xf32> to vector<8x128xf32>
    %197 = vector.extract_strided_slice %194 {offsets = [0, 256], sizes = [8, 128], strides = [1, 1]} : vector<8x384xf32> to vector<8x128xf32>
    %198 = vector.extract_strided_slice %195 {offsets = [0, 0], sizes = [8, 32], strides = [1, 1]} : vector<8x128xf32> to vector<8x32xf32>
    %199 = vector.extract_strided_slice %196 {offsets = [0, 0], sizes = [8, 32], strides = [1, 1]} : vector<8x128xf32> to vector<8x32xf32>
    %200 = vector.extract_strided_slice %197 {offsets = [0, 0], sizes = [8, 32], strides = [1, 1]} : vector<8x128xf32> to vector<8x32xf32>
    %cst_91 = arith.constant dense<0.000000e+00> : vector<8x8xf32>
    %201 = tpu.matmul %198, %199, %cst_91 {dimension_numbers = #tpu.dot_dimension_numbers<[1], [1], [0], [0], [0, 0, 1, 0], [], []>} : vector<8x32xf32>, vector<8x32xf32>, vector<8x8xf32> -> vector<8x8xf32>
    %cst_92 = arith.constant 0.176776692 : f32
    %202 = vector.broadcast %cst_92 : f32 to vector<8x8xf32>
    %203 = arith.mulf %201, %202 : vector<8x8xf32>
    %204 = vector.broadcast %27 : vector<1x8xf32> to vector<8x8xf32>
    %205 = arith.addf %203, %204 : vector<8x8xf32>
    %cst_93 = arith.constant dense<0xFF800000> : vector<8xf32>
    %206 = vector.multi_reduction <maximumf>, %205, %cst_93 [1] : vector<8x8xf32> to vector<8xf32>
    %207 = vector.shape_cast %206 : vector<8xf32> to vector<8x1xf32>
    %208 = vector.broadcast %207 : vector<8x1xf32> to vector<8x8xf32>
    %209 = arith.subf %205, %208 : vector<8x8xf32>
    %210 = math.exp %209 : vector<8x8xf32>
    %cst_94 = arith.constant dense<0.000000e+00> : vector<8xf32>
    %211 = vector.multi_reduction <add>, %210, %cst_94 [1] : vector<8x8xf32> to vector<8xf32>
    %212 = vector.shape_cast %211 : vector<8xf32> to vector<8x1xf32>
    %213 = vector.broadcast %212 : vector<8x1xf32> to vector<8x8xf32>
    %214 = arith.divf %210, %213 : vector<8x8xf32>
    %cst_95 = arith.constant dense<0.000000e+00> : vector<8x32xf32>
    %215 = tpu.matmul %214, %200, %cst_95 {dimension_numbers = #tpu.dot_dimension_numbers<[1], [0], [0], [1], [0, 0, 1, 1], [], []>} : vector<8x8xf32>, vector<8x32xf32>, vector<8x32xf32> -> vector<8x32xf32>
    %216 = vector.extract_strided_slice %195 {offsets = [0, 32], sizes = [8, 32], strides = [1, 1]} : vector<8x128xf32> to vector<8x32xf32>
    %217 = vector.extract_strided_slice %196 {offsets = [0, 32], sizes = [8, 32], strides = [1, 1]} : vector<8x128xf32> to vector<8x32xf32>
    %218 = vector.extract_strided_slice %197 {offsets = [0, 32], sizes = [8, 32], strides = [1, 1]} : vector<8x128xf32> to vector<8x32xf32>
    %cst_96 = arith.constant dense<0.000000e+00> : vector<8x8xf32>
    %219 = tpu.matmul %216, %217, %cst_96 {dimension_numbers = #tpu.dot_dimension_numbers<[1], [1], [0], [0], [0, 0, 1, 0], [], []>} : vector<8x32xf32>, vector<8x32xf32>, vector<8x8xf32> -> vector<8x8xf32>
    %cst_97 = arith.constant 0.176776692 : f32
    %220 = vector.broadcast %cst_97 : f32 to vector<8x8xf32>
    %221 = arith.mulf %219, %220 : vector<8x8xf32>
    %222 = vector.broadcast %27 : vector<1x8xf32> to vector<8x8xf32>
    %223 = arith.addf %221, %222 : vector<8x8xf32>
    %cst_98 = arith.constant dense<0xFF800000> : vector<8xf32>
    %224 = vector.multi_reduction <maximumf>, %223, %cst_98 [1] : vector<8x8xf32> to vector<8xf32>
    %225 = vector.shape_cast %224 : vector<8xf32> to vector<8x1xf32>
    %226 = vector.broadcast %225 : vector<8x1xf32> to vector<8x8xf32>
    %227 = arith.subf %223, %226 : vector<8x8xf32>
    %228 = math.exp %227 : vector<8x8xf32>
    %cst_99 = arith.constant dense<0.000000e+00> : vector<8xf32>
    %229 = vector.multi_reduction <add>, %228, %cst_99 [1] : vector<8x8xf32> to vector<8xf32>
    %230 = vector.shape_cast %229 : vector<8xf32> to vector<8x1xf32>
    %231 = vector.broadcast %230 : vector<8x1xf32> to vector<8x8xf32>
    %232 = arith.divf %228, %231 : vector<8x8xf32>
    %cst_100 = arith.constant dense<0.000000e+00> : vector<8x32xf32>
    %233 = tpu.matmul %232, %218, %cst_100 {dimension_numbers = #tpu.dot_dimension_numbers<[1], [0], [0], [1], [0, 0, 1, 1], [], []>} : vector<8x8xf32>, vector<8x32xf32>, vector<8x32xf32> -> vector<8x32xf32>
    %234 = vector.extract_strided_slice %195 {offsets = [0, 64], sizes = [8, 32], strides = [1, 1]} : vector<8x128xf32> to vector<8x32xf32>
    %235 = vector.extract_strided_slice %196 {offsets = [0, 64], sizes = [8, 32], strides = [1, 1]} : vector<8x128xf32> to vector<8x32xf32>
    %236 = vector.extract_strided_slice %197 {offsets = [0, 64], sizes = [8, 32], strides = [1, 1]} : vector<8x128xf32> to vector<8x32xf32>
    %cst_101 = arith.constant dense<0.000000e+00> : vector<8x8xf32>
    %237 = tpu.matmul %234, %235, %cst_101 {dimension_numbers = #tpu.dot_dimension_numbers<[1], [1], [0], [0], [0, 0, 1, 0], [], []>} : vector<8x32xf32>, vector<8x32xf32>, vector<8x8xf32> -> vector<8x8xf32>
    %cst_102 = arith.constant 0.176776692 : f32
    %238 = vector.broadcast %cst_102 : f32 to vector<8x8xf32>
    %239 = arith.mulf %237, %238 : vector<8x8xf32>
    %240 = vector.broadcast %27 : vector<1x8xf32> to vector<8x8xf32>
    %241 = arith.addf %239, %240 : vector<8x8xf32>
    %cst_103 = arith.constant dense<0xFF800000> : vector<8xf32>
    %242 = vector.multi_reduction <maximumf>, %241, %cst_103 [1] : vector<8x8xf32> to vector<8xf32>
    %243 = vector.shape_cast %242 : vector<8xf32> to vector<8x1xf32>
    %244 = vector.broadcast %243 : vector<8x1xf32> to vector<8x8xf32>
    %245 = arith.subf %241, %244 : vector<8x8xf32>
    %246 = math.exp %245 : vector<8x8xf32>
    %cst_104 = arith.constant dense<0.000000e+00> : vector<8xf32>
    %247 = vector.multi_reduction <add>, %246, %cst_104 [1] : vector<8x8xf32> to vector<8xf32>
    %248 = vector.shape_cast %247 : vector<8xf32> to vector<8x1xf32>
    %249 = vector.broadcast %248 : vector<8x1xf32> to vector<8x8xf32>
    %250 = arith.divf %246, %249 : vector<8x8xf32>
    %cst_105 = arith.constant dense<0.000000e+00> : vector<8x32xf32>
    %251 = tpu.matmul %250, %236, %cst_105 {dimension_numbers = #tpu.dot_dimension_numbers<[1], [0], [0], [1], [0, 0, 1, 1], [], []>} : vector<8x8xf32>, vector<8x32xf32>, vector<8x32xf32> -> vector<8x32xf32>
    %252 = vector.extract_strided_slice %195 {offsets = [0, 96], sizes = [8, 32], strides = [1, 1]} : vector<8x128xf32> to vector<8x32xf32>
    %253 = vector.extract_strided_slice %196 {offsets = [0, 96], sizes = [8, 32], strides = [1, 1]} : vector<8x128xf32> to vector<8x32xf32>
    %254 = vector.extract_strided_slice %197 {offsets = [0, 96], sizes = [8, 32], strides = [1, 1]} : vector<8x128xf32> to vector<8x32xf32>
    %cst_106 = arith.constant dense<0.000000e+00> : vector<8x8xf32>
    %255 = tpu.matmul %252, %253, %cst_106 {dimension_numbers = #tpu.dot_dimension_numbers<[1], [1], [0], [0], [0, 0, 1, 0], [], []>} : vector<8x32xf32>, vector<8x32xf32>, vector<8x8xf32> -> vector<8x8xf32>
    %cst_107 = arith.constant 0.176776692 : f32
    %256 = vector.broadcast %cst_107 : f32 to vector<8x8xf32>
    %257 = arith.mulf %255, %256 : vector<8x8xf32>
    %258 = vector.broadcast %27 : vector<1x8xf32> to vector<8x8xf32>
    %259 = arith.addf %257, %258 : vector<8x8xf32>
    %cst_108 = arith.constant dense<0xFF800000> : vector<8xf32>
    %260 = vector.multi_reduction <maximumf>, %259, %cst_108 [1] : vector<8x8xf32> to vector<8xf32>
    %261 = vector.shape_cast %260 : vector<8xf32> to vector<8x1xf32>
    %262 = vector.broadcast %261 : vector<8x1xf32> to vector<8x8xf32>
    %263 = arith.subf %259, %262 : vector<8x8xf32>
    %264 = math.exp %263 : vector<8x8xf32>
    %cst_109 = arith.constant dense<0.000000e+00> : vector<8xf32>
    %265 = vector.multi_reduction <add>, %264, %cst_109 [1] : vector<8x8xf32> to vector<8xf32>
    %266 = vector.shape_cast %265 : vector<8xf32> to vector<8x1xf32>
    %267 = vector.broadcast %266 : vector<8x1xf32> to vector<8x8xf32>
    %268 = arith.divf %264, %267 : vector<8x8xf32>
    %cst_110 = arith.constant dense<0.000000e+00> : vector<8x32xf32>
    %269 = tpu.matmul %268, %254, %cst_110 {dimension_numbers = #tpu.dot_dimension_numbers<[1], [0], [0], [1], [0, 0, 1, 1], [], []>} : vector<8x8xf32>, vector<8x32xf32>, vector<8x32xf32> -> vector<8x32xf32>
    %270 = tpu.concatenate %215, %233, %251, %269 in 1 : vector<8x32xf32>, vector<8x32xf32>, vector<8x32xf32>, vector<8x32xf32> -> vector<8x128xf32>
    %c1_111 = arith.constant 1 : index
    %c0_112 = arith.constant 0 : index
    %c0_113 = arith.constant 0 : index
    %271 = vector.load %arg7[%c1_111, %c0_112, %c0_113] : memref<2x128x128xf32, #tpu.memory_space<vmem>>, vector<1x128x128xf32>
    %272 = vector.shape_cast %271 : vector<1x128x128xf32> to vector<128x128xf32>
    %cst_114 = arith.constant dense<0.000000e+00> : vector<8x128xf32>
    %273 = tpu.matmul %270, %272, %cst_114 {dimension_numbers = #tpu.dot_dimension_numbers<[1], [0], [0], [1], [0, 0, 1, 1], [], []>} : vector<8x128xf32>, vector<128x128xf32>, vector<8x128xf32> -> vector<8x128xf32>
    %c1_115 = arith.constant 1 : index
    %c0_116 = arith.constant 0 : index
    %c0_117 = arith.constant 0 : index
    %274 = vector.load %arg8[%c1_115, %c0_116, %c0_117] : memref<2x1x128xf32, #tpu.memory_space<vmem>>, vector<1x1x128xf32>
    %275 = vector.shape_cast %274 : vector<1x1x128xf32> to vector<1x128xf32>
    %276 = vector.broadcast %275 : vector<1x128xf32> to vector<8x128xf32>
    %277 = arith.addf %273, %276 : vector<8x128xf32>
    %278 = arith.addf %187, %277 : vector<8x128xf32>
    %c1_118 = arith.constant 1 : index
    %c0_119 = arith.constant 0 : index
    %c0_120 = arith.constant 0 : index
    %279 = vector.load %arg9[%c1_118, %c0_119, %c0_120] : memref<2x1x128xf32, #tpu.memory_space<vmem>>, vector<1x1x128xf32>
    %280 = vector.shape_cast %279 : vector<1x1x128xf32> to vector<1x128xf32>
    %c1_121 = arith.constant 1 : index
    %c0_122 = arith.constant 0 : index
    %c0_123 = arith.constant 0 : index
    %281 = vector.load %arg10[%c1_121, %c0_122, %c0_123] : memref<2x1x128xf32, #tpu.memory_space<vmem>>, vector<1x1x128xf32>
    %282 = vector.shape_cast %281 : vector<1x1x128xf32> to vector<1x128xf32>
    %cst_124 = arith.constant dense<0.000000e+00> : vector<8xf32>
    %283 = vector.multi_reduction <add>, %278, %cst_124 [1] : vector<8x128xf32> to vector<8xf32>
    %284 = vector.shape_cast %283 : vector<8xf32> to vector<8x1xf32>
    %cst_125 = arith.constant 1.280000e+02 : f32
    %285 = vector.broadcast %cst_125 : f32 to vector<8x1xf32>
    %286 = arith.divf %284, %285 : vector<8x1xf32>
    %287 = arith.mulf %278, %278 : vector<8x128xf32>
    %cst_126 = arith.constant dense<0.000000e+00> : vector<8xf32>
    %288 = vector.multi_reduction <add>, %287, %cst_126 [1] : vector<8x128xf32> to vector<8xf32>
    %289 = vector.shape_cast %288 : vector<8xf32> to vector<8x1xf32>
    %cst_127 = arith.constant 1.280000e+02 : f32
    %290 = vector.broadcast %cst_127 : f32 to vector<8x1xf32>
    %291 = arith.divf %289, %290 : vector<8x1xf32>
    %292 = arith.mulf %286, %286 : vector<8x1xf32>
    %293 = arith.subf %291, %292 : vector<8x1xf32>
    %294 = vector.broadcast %286 : vector<8x1xf32> to vector<8x128xf32>
    %295 = arith.subf %278, %294 : vector<8x128xf32>
    %cst_128 = arith.constant 9.99999974E-6 : f32
    %296 = vector.broadcast %cst_128 : f32 to vector<8x1xf32>
    %297 = arith.addf %293, %296 : vector<8x1xf32>
    %298 = math.rsqrt %297 : vector<8x1xf32>
    %299 = vector.broadcast %298 : vector<8x1xf32> to vector<8x128xf32>
    %300 = arith.mulf %295, %299 : vector<8x128xf32>
    %301 = vector.broadcast %280 : vector<1x128xf32> to vector<8x128xf32>
    %302 = arith.mulf %300, %301 : vector<8x128xf32>
    %303 = vector.broadcast %282 : vector<1x128xf32> to vector<8x128xf32>
    %304 = arith.addf %302, %303 : vector<8x128xf32>
    %c1_129 = arith.constant 1 : index
    %c0_130 = arith.constant 0 : index
    %c0_131 = arith.constant 0 : index
    %305 = vector.load %arg11[%c1_129, %c0_130, %c0_131] : memref<2x128x256xf32, #tpu.memory_space<vmem>>, vector<1x128x256xf32>
    %306 = vector.shape_cast %305 : vector<1x128x256xf32> to vector<128x256xf32>
    %cst_132 = arith.constant dense<0.000000e+00> : vector<8x256xf32>
    %307 = tpu.matmul %304, %306, %cst_132 {dimension_numbers = #tpu.dot_dimension_numbers<[1], [0], [0], [1], [0, 0, 1, 1], [], []>} : vector<8x128xf32>, vector<128x256xf32>, vector<8x256xf32> -> vector<8x256xf32>
    %c1_133 = arith.constant 1 : index
    %c0_134 = arith.constant 0 : index
    %c0_135 = arith.constant 0 : index
    %308 = vector.load %arg12[%c1_133, %c0_134, %c0_135] : memref<2x1x256xf32, #tpu.memory_space<vmem>>, vector<1x1x256xf32>
    %309 = vector.shape_cast %308 : vector<1x1x256xf32> to vector<1x256xf32>
    %310 = vector.broadcast %309 : vector<1x256xf32> to vector<8x256xf32>
    %311 = arith.addf %307, %310 : vector<8x256xf32>
    %cst_136 = arith.constant 0.000000e+00 : f32
    %312 = vector.broadcast %cst_136 : f32 to vector<8x256xf32>
    %313 = arith.maximumf %311, %312 : vector<8x256xf32>
    %c1_137 = arith.constant 1 : index
    %c0_138 = arith.constant 0 : index
    %c0_139 = arith.constant 0 : index
    %314 = vector.load %arg13[%c1_137, %c0_138, %c0_139] : memref<2x256x128xf32, #tpu.memory_space<vmem>>, vector<1x256x128xf32>
    %315 = vector.shape_cast %314 : vector<1x256x128xf32> to vector<256x128xf32>
    %cst_140 = arith.constant dense<0.000000e+00> : vector<8x128xf32>
    %316 = tpu.matmul %313, %315, %cst_140 {dimension_numbers = #tpu.dot_dimension_numbers<[1], [0], [0], [1], [0, 0, 1, 1], [], []>} : vector<8x256xf32>, vector<256x128xf32>, vector<8x128xf32> -> vector<8x128xf32>
    %c1_141 = arith.constant 1 : index
    %c0_142 = arith.constant 0 : index
    %c0_143 = arith.constant 0 : index
    %317 = vector.load %arg14[%c1_141, %c0_142, %c0_143] : memref<2x1x128xf32, #tpu.memory_space<vmem>>, vector<1x1x128xf32>
    %318 = vector.shape_cast %317 : vector<1x1x128xf32> to vector<1x128xf32>
    %319 = vector.broadcast %318 : vector<1x128xf32> to vector<8x128xf32>
    %320 = arith.addf %316, %319 : vector<8x128xf32>
    %321 = arith.addf %304, %320 : vector<8x128xf32>
    %c1_144 = arith.constant 1 : index
    %c0_145 = arith.constant 0 : index
    %c0_146 = arith.constant 0 : index
    %322 = vector.load %arg15[%c1_144, %c0_145, %c0_146] : memref<2x1x128xf32, #tpu.memory_space<vmem>>, vector<1x1x128xf32>
    %323 = vector.shape_cast %322 : vector<1x1x128xf32> to vector<1x128xf32>
    %c1_147 = arith.constant 1 : index
    %c0_148 = arith.constant 0 : index
    %c0_149 = arith.constant 0 : index
    %324 = vector.load %arg16[%c1_147, %c0_148, %c0_149] : memref<2x1x128xf32, #tpu.memory_space<vmem>>, vector<1x1x128xf32>
    %325 = vector.shape_cast %324 : vector<1x1x128xf32> to vector<1x128xf32>
    %cst_150 = arith.constant dense<0.000000e+00> : vector<8xf32>
    %326 = vector.multi_reduction <add>, %321, %cst_150 [1] : vector<8x128xf32> to vector<8xf32>
    %327 = vector.shape_cast %326 : vector<8xf32> to vector<8x1xf32>
    %cst_151 = arith.constant 1.280000e+02 : f32
    %328 = vector.broadcast %cst_151 : f32 to vector<8x1xf32>
    %329 = arith.divf %327, %328 : vector<8x1xf32>
    %330 = arith.mulf %321, %321 : vector<8x128xf32>
    %cst_152 = arith.constant dense<0.000000e+00> : vector<8xf32>
    %331 = vector.multi_reduction <add>, %330, %cst_152 [1] : vector<8x128xf32> to vector<8xf32>
    %332 = vector.shape_cast %331 : vector<8xf32> to vector<8x1xf32>
    %cst_153 = arith.constant 1.280000e+02 : f32
    %333 = vector.broadcast %cst_153 : f32 to vector<8x1xf32>
    %334 = arith.divf %332, %333 : vector<8x1xf32>
    %335 = arith.mulf %329, %329 : vector<8x1xf32>
    %336 = arith.subf %334, %335 : vector<8x1xf32>
    %337 = vector.broadcast %329 : vector<8x1xf32> to vector<8x128xf32>
    %338 = arith.subf %321, %337 : vector<8x128xf32>
    %cst_154 = arith.constant 9.99999974E-6 : f32
    %339 = vector.broadcast %cst_154 : f32 to vector<8x1xf32>
    %340 = arith.addf %336, %339 : vector<8x1xf32>
    %341 = math.rsqrt %340 : vector<8x1xf32>
    %342 = vector.broadcast %341 : vector<8x1xf32> to vector<8x128xf32>
    %343 = arith.mulf %338, %342 : vector<8x128xf32>
    %344 = vector.broadcast %323 : vector<1x128xf32> to vector<8x128xf32>
    %345 = arith.mulf %343, %344 : vector<8x128xf32>
    %346 = vector.broadcast %325 : vector<1x128xf32> to vector<8x128xf32>
    %347 = arith.addf %345, %346 : vector<8x128xf32>
    %c0_155 = arith.constant 0 : index
    %c0_156 = arith.constant 0 : index
    %348 = vector.load %arg17[%c0_155, %c0_156] : memref<8x128xf32, #tpu.memory_space<vmem>>, vector<8x128xf32>
    tpu.vector_store %arg17[%c0_155, %c0_156], %347 {strides = array<i32>} : memref<8x128xf32, #tpu.memory_space<vmem>>, vector<8x128xf32>,
    return
  }
}

</mosaic_0001>

<bundles_post_ra>
// kernel: tpu_custom_call.1
= control target key start
LH: loop header
LB: loop body
LE: loop exit
PB: predicated region body
PF: predicated region fallthrough
CT: control target
= control target key end

     0   :  { %s4466_s0 = inlined_call_operand.hbm [shape: f32[8,32], index: 0, kind: input, shape index: {}]   ;;  %s4467_s1 = inlined_call_operand.hbm [shape: f32[1,8], index: 1, kind: input, shape index: {}]   ;;  %s4468_s2 = inlined_call_operand.hbm [shape: f32[1,32], index: 2, kind: input, shape index: {}]   ;;  %s4469_s3 = inlined_call_operand.hbm [shape: f32[1,32], index: 3, kind: input, shape index: {}]   ;;  %s4470_s4 = inlined_call_operand.hbm [shape: f32[32,128], index: 4, kind: input, shape index: {}]   ;;  %s4471_s5 = inlined_call_operand.hbm [shape: f32[2,128,384], index: 5, kind: input, shape index: {}]   ;;  %s4472_s6 = inlined_call_operand.vmem [shape: f32[2,1,384], index: 6, kind: input, shape index: {}]   ;;  %s4473_s7 = inlined_call_operand.hbm [shape: f32[2,128,128], index: 7, kind: input, shape index: {}]   ;;  %s4474_s8 = inlined_call_operand.vmem [shape: f32[2,1,128], index: 8, kind: input, shape index: {}]   ;;  %s4475_s9 = inlined_call_operand.vmem [shape: f32[2,1,128], index: 9, kind: input, shape index: {}]   ;;  %s4476_s10 = inlined_call_operand.vmem [shape: f32[2,1,128], index: 10, kind: input, shape index: {}]   ;;  %s4477_s11 = inlined_call_operand.hbm [shape: f32[2,128,256], index: 11, kind: input, shape index: {}]   ;;  %s4478_s12 = inlined_call_operand.vmem [shape: f32[2,1,256], index: 12, kind: input, shape index: {}]   ;;  %s4479_s13 = inlined_call_operand.hbm [shape: f32[2,256,128], index: 13, kind: input, shape index: {}]   ;;  %s4480_s14 = inlined_call_operand.vmem [shape: f32[2,1,128], index: 14, kind: input, shape index: {}]   ;;  %s4481_s15 = inlined_call_operand.vmem [shape: f32[2,1,128], index: 15, kind: input, shape index: {}]   ;;  %s4482_s16 = inlined_call_operand.vmem [shape: f32[2,1,128], index: 16, kind: input, shape index: {}]   ;;  %s4483_s17 = inlined_call_operand.hbm [shape: f32[8,128], index: 17, kind: output, shape index: {}]  }
   0x1   :  { %4486 = sst [smem:[#allocation24_spill]] %s4466_s0 }
   0x2   :  { %4487 = sst [smem:[#allocation25_spill]] %s4467_s1 }
   0x3   :  { %22 = vsyncpa [#allocation3], 0 }
   0x4   :  { %23 = vsyncpa [#allocation6], 0 }
   0x5   :  { %24 = vsyncpa [#allocation9], 0 }
   0x6   :  { %25 = vsyncpa [#allocation12], 0 }
   0x7   :  { %26 = vsyncpa [#allocation15], 0 }
   0x8   :  { %27 = vsyncpa [#allocation4], 0  ;;  %s3905_s24 = smov [#allocation5]   ;;  %s3906_s26 = smov [#allocation8]  }
   0x9   :  { %s44_s25 = sshll.u32 %s3905_s24, 4  ;;  %s64_s27 = sshll.u32 %s3906_s26, 4  ;;  %s45_s25 = int_to_ptr.vmem [resolvable:$true] %s44_s25  ;;  %s65_s27 = int_to_ptr.vmem [resolvable:$true] %s64_s27 }
   0xa   :  { %s4488_s0 = sld [smem:[#allocation25_spill]] }
  0x10   :  { %s3673_s30 = scalar_lea.hbm %s4488_s0, 16 }
  0x11   :  { %p3674_p0 = scmp.ne.s32.totalorder %s4488_s0, %s3673_s30  ;;  %p3677_p1 = scmp.lt.u32.totalorder %s3673_s30, %s4488_s0 }
  0x13   :  { %p3679_p2 = pnand %p3677_p1, %p3674_p0 }
  0x15   :  { %3682 = shalt.err (!%p3679_p2)
}
  0x16   :  { %s3683_s21 = scalar_lea.vmem %s45_s25, 16  ;;  %s3687_s22 = scalar_lea.vmem %s45_s25, 32 }
  0x17   :  { %p3684_p3 = scmp.ne.s32.totalorder %s45_s25, %s3683_s21  ;;  %p3688_p4 = scmp.lt.s32.totalorder %s45_s25, %s45_s25 }
  0x18   :  { %p3689_p5 = scmp.lt.s32.totalorder %s3687_s22, %s3683_s21 }
  0x1a   :  { %p3690_p6 = por %p3689_p5, %p3688_p4 }
  0x1c   :  { %p3691_p7 = pnand %p3690_p6, %p3684_p3 }
  0x1e   :  { %3694 = shalt.err (!%p3691_p7)
}
  0x1f   :  { %47 = dma.hbm_to_vmem [thread:$0]  %s4488_s0, 16, %s45_s25, [#allocation6]  }
  0x20   :  { %s3695_s29 = scalar_lea.hbm %s4469_s3, 16 }
  0x21   :  { %p3696_p8 = scmp.ne.s32.totalorder %s4469_s3, %s3695_s29  ;;  %p3699_p9 = scmp.lt.u32.totalorder %s3695_s29, %s4469_s3 }
  0x23   :  { %p3701_p10 = pnand %p3699_p9, %p3696_p8 }
  0x25   :  { %3704 = shalt.err (!%p3701_p10)
}
  0x26   :  { %s3705_s20 = scalar_lea.vmem %s65_s27, 16  ;;  %s3709_s21 = scalar_lea.vmem %s65_s27, 32 }
  0x27   :  { %p3706_p11 = scmp.ne.s32.totalorder %s65_s27, %s3705_s20  ;;  %p3710_p12 = scmp.lt.s32.totalorder %s65_s27, %s65_s27 }
  0x28   :  { %p3711_p13 = scmp.lt.s32.totalorder %s3709_s21, %s3705_s20 }
  0x2a   :  { %p3712_p0 = por %p3711_p13, %p3710_p12 }
  0x2c   :  { %p3713_p1 = pnand %p3712_p0, %p3706_p11 }
  0x2e   :  { %3716 = shalt.err (!%p3713_p1)
}
  0x2f   :  { %67 = dma.hbm_to_vmem [thread:$0]  %s4469_s3, 16, %s65_s27, [#allocation9]  }
  0x30   :  { %s3907_s22 = smov [#allocation11]   ;;  %s3717_s28 = scalar_lea.hbm %s4471_s5, 12288 }
  0x31   :  { %s85_s23 = sshll.u32 %s3907_s22, 4  ;;  %p3718_p2 = scmp.ne.s32.totalorder %s4471_s5, %s3717_s28  ;;  %s86_s23 = int_to_ptr.vmem [resolvable:$true] %s85_s23 }
  0x32   :  { %p3721_p3 = scmp.lt.u32.totalorder %s3717_s28, %s4471_s5 }
  0x34   :  { %p3723_p4 = pnand %p3721_p3, %p3718_p2 }
  0x36   :  { %3726 = shalt.err (!%p3723_p4)
}
  0x37   :  { %s3727_s1 = scalar_lea.vmem %s86_s23, 12288  ;;  %p3732_p6 = scmp.lt.s32.totalorder %s86_s23, %s86_s23 }
  0x38   :  { %p3728_p5 = scmp.ne.s32.totalorder %s86_s23, %s3727_s1  ;;  %p3733_p7 = scmp.lt.s32.totalorder %s3727_s1, %s3727_s1 }
  0x3a   :  { %p3734_p8 = por %p3733_p7, %p3732_p6 }
  0x3c   :  { %p3735_p9 = pnand %p3734_p8, %p3728_p5 }
  0x3e   :  { %3738 = shalt.err (!%p3735_p9)
}
  0x3f   :  { %s3908_s3 = smov 384   ;;  %s3909_s27 = smov 24  }
  0x40   :  { %91 = dma.hbm_to_vmem [thread:$0]  %s4471_s5, 12288, %s86_s23, [#allocation12], %s3908_s3, %s3908_s3, %s3909_s27  }
  0x41   :  { %s3910_s25 = smov [#allocation14]   ;;  %s3739_s26 = scalar_lea.hbm %s4477_s11, 8192 }
  0x42   :  { %s117_s0 = sshll.u32 %s3910_s25, 4  ;;  %p3740_p10 = scmp.ne.s32.totalorder %s4477_s11, %s3739_s26  ;;  %s118_s0 = int_to_ptr.vmem [resolvable:$true] %s117_s0 }
  0x43   :  { %p3743_p11 = scmp.lt.u32.totalorder %s3739_s26, %s4477_s11 }
  0x45   :  { %p3745_p12 = pnand %p3743_p11, %p3740_p10 }
  0x47   :  { %3748 = shalt.err (!%p3745_p12)
}
  0x48   :  { %s3749_s19 = scalar_lea.vmem %s118_s0, 8192  ;;  %p3754_p0 = scmp.lt.s32.totalorder %s118_s0, %s118_s0 }
  0x49   :  { %p3750_p13 = scmp.ne.s32.totalorder %s118_s0, %s3749_s19  ;;  %p3755_p1 = scmp.lt.s32.totalorder %s3749_s19, %s3749_s19 }
  0x4b   :  { %p3756_p2 = por %p3755_p1, %p3754_p0 }
  0x4d   :  { %p3757_p3 = pnand %p3756_p2, %p3750_p13 }
  0x4f   :  { %3760 = shalt.err (!%p3757_p3)
}
  0x50   :  { %s3911_s5 = smov 256   ;;  %s3912_s23 = smov 16  }
  0x51   :  { %123 = dma.hbm_to_vmem [thread:$0]  %s4477_s11, 8192, %s118_s0, [#allocation15], %s3911_s5, %s3911_s5, %s3912_s23  }
  0x52   :  { %s3913_s27 = smov [#allocation2]   ;;  %s3914_s21 = smov [#allocation7]  }
  0x53   :  { %s34_s20 = sshll.u32 %s3913_s27, 4  ;;  %s54_s25 = sshll.u32 %s3914_s21, 4  ;;  %s35_s20 = int_to_ptr.vmem [resolvable:$true] %s34_s20  ;;  %s55_s25 = int_to_ptr.vmem [resolvable:$true] %s54_s25 }
  0x54   :  { %s4489_s26 = sld [smem:[#allocation24_spill]] }
  0x5a   :  { %s3761_s28 = scalar_lea.hbm %s4489_s26, 128 }
  0x5b   :  { %p3762_p4 = scmp.ne.s32.totalorder %s4489_s26, %s3761_s28  ;;  %p3765_p5 = scmp.lt.u32.totalorder %s3761_s28, %s4489_s26 }
  0x5d   :  { %p3767_p6 = pnand %p3765_p5, %p3762_p4 }
  0x5f   :  { %3770 = shalt.err (!%p3767_p6)
}
  0x60   :  { %s3771_s11 = scalar_lea.vmem %s35_s20, 128  ;;  %p3776_p8 = scmp.lt.s32.totalorder %s35_s20, %s35_s20 }
  0x61   :  { %p3772_p7 = scmp.ne.s32.totalorder %s35_s20, %s3771_s11  ;;  %p3777_p9 = scmp.lt.s32.totalorder %s3771_s11, %s3771_s11 }
  0x63   :  { %p3778_p10 = por %p3777_p9, %p3776_p8 }
  0x65   :  { %p3779_p11 = pnand %p3778_p10, %p3772_p7 }
  0x67   :  { %3782 = shalt.err (!%p3779_p11)
}
  0x68   :  { %37 = dma.hbm_to_vmem [thread:$0]  %s4489_s26, 128, %s35_s20, [#allocation3]  }
  0x69   :  { %s3783_s3 = scalar_lea.hbm %s4468_s2, 16 }
  0x6a   :  { %p3784_p12 = scmp.ne.s32.totalorder %s4468_s2, %s3783_s3  ;;  %p3787_p13 = scmp.lt.u32.totalorder %s3783_s3, %s4468_s2 }
  0x6c   :  { %p3789_p0 = pnand %p3787_p13, %p3784_p12 }
  0x6e   :  { %3792 = shalt.err (!%p3789_p0)
}
  0x6f   :  { %s3793_s28 = scalar_lea.vmem %s55_s25, 16  ;;  %s3797_s29 = scalar_lea.vmem %s55_s25, 32 }
  0x70   :  { %p3794_p1 = scmp.ne.s32.totalorder %s55_s25, %s3793_s28  ;;  %p3798_p2 = scmp.lt.s32.totalorder %s55_s25, %s55_s25 }
  0x71   :  { %p3799_p3 = scmp.lt.s32.totalorder %s3797_s29, %s3793_s28 }
  0x73   :  { %p3800_p4 = por %p3799_p3, %p3798_p2 }
  0x75   :  { %p3801_p5 = pnand %p3800_p4, %p3794_p1 }
  0x77   :  { %3804 = shalt.err (!%p3801_p5)
}
  0x78   :  { %57 = dma.hbm_to_vmem [thread:$0]  %s4468_s2, 16, %s55_s25, [#allocation6]  }
  0x79   :  { %s3915_s18 = smov [#allocation10]   ;;  %s3805_s0 = scalar_lea.hbm %s4470_s4, 512 }
  0x7a   :  { %s73_s30 = sshll.u32 %s3915_s18, 4  ;;  %p3806_p6 = scmp.ne.s32.totalorder %s4470_s4, %s3805_s0  ;;  %s74_s30 = int_to_ptr.vmem [resolvable:$true] %s73_s30 }
  0x7b   :  { %p3809_p7 = scmp.lt.u32.totalorder %s3805_s0, %s4470_s4 }
  0x7d   :  { %p3811_p8 = pnand %p3809_p7, %p3806_p6 }
  0x7f   :  { %3814 = shalt.err (!%p3811_p8)
}
  0x80   :  { %s3815_s27 = scalar_lea.vmem %s74_s30, 512  ;;  %p3820_p10 = scmp.lt.s32.totalorder %s74_s30, %s74_s30 }
  0x81   :  { %p3816_p9 = scmp.ne.s32.totalorder %s74_s30, %s3815_s27  ;;  %p3821_p11 = scmp.lt.s32.totalorder %s3815_s27, %s3815_s27 }
  0x83   :  { %p3822_p12 = por %p3821_p11, %p3820_p10 }
  0x85   :  { %p3823_p13 = pnand %p3822_p12, %p3816_p9 }
  0x87   :  { %3826 = shalt.err (!%p3823_p13)
}
  0x88   :  { %s3916_s2 = smov 128   ;;  %s3917_s25 = smov 8  }
  0x89   :  { %79 = dma.hbm_to_vmem [thread:$0]  %s4470_s4, 512, %s74_s30, [#allocation9], %s3916_s2, %s3916_s2, %s3917_s25  }
  0x8a   :  { %s3918_s24 = smov [#allocation13]   ;;  %s3919_s29 = smov [#allocation16]  }
  0x8b   :  { %s99_s28 = sshll.u32 %s3918_s24, 4  ;;  %s131_s20 = sshll.u32 %s3919_s29, 4  ;;  %s100_s28 = int_to_ptr.vmem [resolvable:$true] %s99_s28  ;;  %s132_s20 = int_to_ptr.vmem [resolvable:$true] %s131_s20 }
  0x8c   :  { %s3827_s19 = scalar_lea.hbm %s4473_s7, 4096 }
  0x8d   :  { %p3828_p0 = scmp.ne.s32.totalorder %s4473_s7, %s3827_s19  ;;  %p3831_p1 = scmp.lt.u32.totalorder %s3827_s19, %s4473_s7 }
  0x8f   :  { %p3833_p2 = pnand %p3831_p1, %p3828_p0 }
  0x91   :  { %3836 = shalt.err (!%p3833_p2)
}
  0x92   :  { %s3837_s4 = scalar_lea.vmem %s100_s28, 4096  ;;  %p3842_p4 = scmp.lt.s32.totalorder %s100_s28, %s100_s28 }
  0x93   :  { %p3838_p3 = scmp.ne.s32.totalorder %s100_s28, %s3837_s4  ;;  %p3843_p5 = scmp.lt.s32.totalorder %s3837_s4, %s3837_s4 }
  0x95   :  { %p3844_p6 = por %p3843_p5, %p3842_p4 }
  0x97   :  { %p3845_p7 = pnand %p3844_p6, %p3838_p3 }
  0x99   :  { %3848 = shalt.err (!%p3845_p7)
}
  0x9a   :  { %105 = dma.hbm_to_vmem [thread:$0]  %s4473_s7, 4096, %s100_s28, [#allocation12], %s3916_s2, %s3916_s2, %s3917_s25  }
  0x9b   :  { %s3849_s21 = scalar_lea.hbm %s4479_s13, 8192 }
  0x9c   :  { %p3850_p8 = scmp.ne.s32.totalorder %s4479_s13, %s3849_s21  ;;  %p3853_p9 = scmp.lt.u32.totalorder %s3849_s21, %s4479_s13 }
  0x9e   :  { %p3855_p10 = pnand %p3853_p9, %p3850_p8 }
  0xa0   :  { %3858 = shalt.err (!%p3855_p10)
}
  0xa1   :  { %s3859_s18 = scalar_lea.vmem %s132_s20, 8192  ;;  %p3864_p12 = scmp.lt.s32.totalorder %s132_s20, %s132_s20 }
  0xa2   :  { %p3860_p11 = scmp.ne.s32.totalorder %s132_s20, %s3859_s18  ;;  %p3865_p13 = scmp.lt.s32.totalorder %s3859_s18, %s3859_s18 }
  0xa4   :  { %p3866_p0 = por %p3865_p13, %p3864_p12 }
  0xa6   :  { %p3867_p1 = pnand %p3866_p0, %p3860_p11 }
  0xa8   :  { %3870 = shalt.err (!%p3867_p1)
}
  0xa9   :  { %137 = dma.hbm_to_vmem [thread:$0]  %s4479_s13, 8192, %s132_s20, [#allocation15], %s3916_s2, %s3916_s2, %s3917_s25  }
  0xaa   :  { %3893 = dma.done.wait [#allocation3], 128  }
  0xab   :  { %3894 = vsyncadd [#allocation3], 4294967168 }
  0xac   :  { %3895 = dma.done.wait [#allocation6], 32  }
  0xad   :  { %3896 = vsyncadd [#allocation6], 4294967264 }
  0xae   :  { %3897 = dma.done.wait [#allocation9], 528  }
  0xaf   :  { %3898 = vsyncadd [#allocation9], 4294966768 }
  0xb0   :  { %3899 = dma.done.wait [#allocation12], 16384  }
  0xb1   :  { %3900 = vsyncadd [#allocation12], 4294950912 }
  0xb2   :  { %3901 = dma.done.wait [#allocation15], 16384  }
  0xb3   :  { %3902 = vsyncadd [#allocation15], 4294950912  ;;  %v3920_v0 = vmov 0.0|0.0   ;;  %vm3921_vm0 = vmmov 0   ;;  %v3922_v1 = vmov 0.0   ;;  %vm172_vm1 = vcmask 261120  }
  0xb4   :  { %3314 = vmatprep.subr.bf16.mxu1 %v3920_v0  ;;  %3091 = vmatprep.mubr.msk.f32.mxu1 %vm3921_vm0, %v3922_v1  ;;  %v212_v2 = vld [vmem:[#allocation10] sm:$0xff]  ;;  %v213_v3 = vld [vmem:[#allocation10 + $0x8] sm:$0xff]  ;;  %v214_v4 = vld [vmem:[#allocation10 + $0x10] sm:$0xff]  ;;  %s3923_s25 = smov 96   ;;  %vm580_vm2 = vcmask 64512   ;;  %s3924_s20 = smov 64  }
  0xb5   :  { %3352 = vmatprep.subr.bf16.mxu0 %v3920_v0  ;;  %3126 = vmatprep.mubr.msk.f32.mxu0 %vm3921_vm0, %v3922_v1  ;;  %v3315_v5 = vpack.c.bf16 %v213_v3, %v212_v2  ;;  %v215_v6 = vld [vmem:[#allocation10 + $0x18] sm:$0xff]  ;;  %v291_v10 = vld [vmem:[#allocation11 + $0x8] sm:$0xff]  ;;  %v294_v11 = vld [vmem:[#allocation11 + $0x20] sm:$0xff]  ;;  %s3925_s19 = smov 32   ;;  %vm1180_vm3 = vcmask 523264   ;;  %vm1182_vm4 = vcmask 785408  }
  0xb6   :  { %v4140_v7 = vld [vmem:[#allocation2] sm:$0xff]  ;;  %v3318_v12 = vpack.c.bf16 %v215_v6, %v214_v4  ;;  %v3320_v16 = vpack.c.bf16 %v294_v11, %v291_v10  ;;  %v295_v17 = vld [vmem:[#allocation11 + $0x28] sm:$0xff]  ;;  %v298_v21 = vld [vmem:[#allocation11 + $0x40] sm:$0xff]  ;;  %s3926_s5 = smov [#allocation17]  }
  0xb7   :  { %v173_v8 = vsel %vm172_vm1, %v4140_v7, 0.0  ;;  %v180_v9 = vmul.f32 %v4140_v7, %v4140_v7  ;;  %3316 = vmatpush3.bf16.msra.mxu1 %v3315_v5  ;;  %v292_v14 = vld [vmem:[#allocation11 + $0x10] sm:$0xff]  ;;  %v301_v22 = vld [vmem:[#allocation11 + $0x58] sm:$0xff]  ;;  %v307_v27 = vld [vmem:[#allocation11 + $0x88] sm:$0xff]  ;;  %s2847_s23 = sshll.u32 %s3926_s5, 4  ;;  %s2848_s23 = int_to_ptr.vmem [resolvable:$true] %s2847_s23 }
  0xb8   :  { %v174_v13 = vrot.slane %v173_v8, 4  ;;  %3317 = vmatprep.subr.bf16.mxu1 %v3920_v0  ;;  %v3353_v20 = vpack.c.bf16 %v295_v17, %v292_v14  ;;  %v3356_v25 = vpack.c.bf16 %v301_v22, %v298_v21  ;;  %v304_v26 = vld [vmem:[#allocation11 + $0x70] sm:$0xff]  ;;  %v310_v33 = vld [vmem:[#allocation11 + $0xa0] sm:$0xff]  ;;  %v313_v34 = vld [vmem:[#allocation11 + $0xb8] sm:$0xff]  ;;  %s3871_s4 = scalar_lea.vmem %s2848_s23, 128  ;;  %p3876_p3 = scmp.lt.s32.totalorder %s2848_s23, %s2848_s23 }
  0xb9   :  { %v181_v15 = vsel %vm172_vm1, %v180_v9, 0.0  ;;  %v3359_v32 = vpack.c.bf16 %v307_v27, %v304_v26  ;;  %v3362_v39 = vpack.c.bf16 %v313_v34, %v310_v33  ;;  %v316_v40 = vld [vmem:[#allocation11 + $0xd0] sm:$0xff]  ;;  %v319_v41 = vld [vmem:[#allocation11 + $0xe8] sm:$0xff]  ;;  %v322_v46 = vld [vmem:[#allocation11 + $0x100] sm:$0xff]  ;;  %p3872_p2 = scmp.ne.s32.totalorder %s2848_s23, %s3871_s4  ;;  %p3877_p4 = scmp.lt.s32.totalorder %s3871_s4, %s3871_s4 }
  0xba   :  { %v175_v18 = vadd.f32 %v174_v13, %v173_v8  ;;  %v182_v19 = vrot.slane %v181_v15, 4  ;;  %3354 = vmatpush3.bf16.msra.mxu0 %v3353_v20  ;;  %v3365_v45 = vpack.c.bf16 %v319_v41, %v316_v40  ;;  %v325_v47 = vld [vmem:[#allocation11 + $0x118] sm:$0xff]  ;;  %v328_v50 = vld [vmem:[#allocation11 + $0x130] sm:$0xff]  ;;  %v331_v51 = vld [vmem:[#allocation11 + $0x148] sm:$0xff] }
  0xbb   :  { %3319 = vmatpush3.bf16.msra.mxu1 %v3318_v12  ;;  %3355 = vmatprep.subr.bf16.mxu0 %v3920_v0  ;;  %v3368_v49 = vpack.c.bf16 %v325_v47, %v322_v46  ;;  %v3371_v52 = vpack.c.bf16 %v331_v51, %v328_v50  ;;  %v334_v53 = vld [vmem:[#allocation11 + $0x160] sm:$0xff]  ;;  %v337_v54 = vld [vmem:[#allocation11 + $0x178] sm:$0xff]  ;;  %v300_v2 = vld [vmem:[#allocation11 + $0x50] sm:$0xff]  ;;  %p3878_p5 = por %p3877_p4, %p3876_p3 }
  0xbc   :  { %v176_v23 = vrot.slane %v175_v18, 2  ;;  %v183_v24 = vadd.f32 %v182_v19, %v181_v15  ;;  %3321 = vmatprep.subr.bf16.mxu1 %v3320_v16  ;;  %v3374_v56 = vpack.c.bf16 %v337_v54, %v334_v53  ;;  %v2860_v58 = vld [vmem:[#allocation7] ss:$0 sm:$0xff]  ;;  %v290_v60 = vld [vmem:[#allocation11] sm:$0xff]  ;;  %v2861_v62 = vld [vmem:[#allocation8] ss:$0 sm:$0xff] }
  0xbd   :  { %v293_v61 = vld [vmem:[#allocation11 + $0x18] sm:$0xff]  ;;  %v299_v8 = vld [vmem:[#allocation11 + $0x48] sm:$0xff]  ;;  %v306_v10 = vld [vmem:[#allocation11 + $0x80] sm:$0xff]  ;;  %p3879_p6 = pnand %p3878_p5, %p3872_p2 }
  0xbe   :  { %v177_v28 = vadd.f32 %v176_v23, %v175_v18  ;;  %v184_v29 = vrot.slane %v183_v24, 2  ;;  %3357 = vmatpush3.bf16.msra.mxu0 %v3356_v25  ;;  %v297_v63 = vld [vmem:[#allocation11 + $0x38] sm:$0xff]  ;;  %v3322_v4 = vpack.c.bf16 %v293_v61, %v290_v60  ;;  %v303_v9 = vld [vmem:[#allocation11 + $0x68] sm:$0xff]  ;;  %v302_v13 = vld [vmem:[#allocation11 + $0x60] sm:$0xff] }
  0xbf   :  { %3358 = vmatprep.subr.bf16.mxu0 %v3920_v0  ;;  %v3324_v6 = vpack.c.bf16 %v300_v2, %v297_v63  ;;  %v3328_v12 = vpack.c.bf16 %v306_v10, %v303_v9  ;;  %v305_v14 = vld [vmem:[#allocation11 + $0x78] sm:$0xff]  ;;  %v312_v16 = vld [vmem:[#allocation11 + $0xb0] sm:$0xff]  ;;  %v311_v20 = vld [vmem:[#allocation11 + $0xa8] sm:$0xff] }
  0xc0   :  { %v178_v30 = vrot.slane %v177_v28, 1  ;;  %v185_v31 = vadd.f32 %v184_v29, %v183_v24  ;;  %v309_v15 = vld [vmem:[#allocation11 + $0x98] sm:$0xff]  ;;  %v3330_v17 = vpack.c.bf16 %v305_v14, %v302_v13  ;;  %v308_v19 = vld [vmem:[#allocation11 + $0x90] sm:$0xff]  ;;  %v315_v21 = vld [vmem:[#allocation11 + $0xc8] sm:$0xff] }
  0xc1   :  { %v3332_v18 = vpack.c.bf16 %v312_v16, %v309_v15  ;;  %v318_v22 = vld [vmem:[#allocation11 + $0xe0] sm:$0xff]  ;;  %v3334_v23 = vpack.c.bf16 %v311_v20, %v308_v19  ;;  %v317_v26 = vld [vmem:[#allocation11 + $0xd8] sm:$0xff]  ;;  %v327_v33 = vld [vmem:[#allocation11 + $0x128] sm:$0xff] }
  0xc2   :  { %v179_v35 = vadd.f32 %v178_v30, %v177_v28  ;;  %v186_v36 = vrot.slane %v185_v31, 1  ;;  %3360 = vmatpush3.bf16.msra.mxu0 %v3359_v32  ;;  %v3336_v24 = vpack.c.bf16 %v318_v22, %v315_v21  ;;  %v314_v25 = vld [vmem:[#allocation11 + $0xc0] sm:$0xff]  ;;  %v321_v27 = vld [vmem:[#allocation11 + $0xf8] sm:$0xff]  ;;  %v324_v28 = vld [vmem:[#allocation11 + $0x110] sm:$0xff] }
  0xc3   :  { %3361 = vmatprep.subr.bf16.mxu0 %v3920_v0  ;;  %v3338_v29 = vpack.c.bf16 %v317_v26, %v314_v25  ;;  %v3340_v30 = vpack.c.bf16 %v324_v28, %v321_v27  ;;  %v323_v32 = vld [vmem:[#allocation11 + $0x108] sm:$0xff]  ;;  %v330_v34 = vld [vmem:[#allocation11 + $0x140] sm:$0xff]  ;;  %v336_v40 = vld [vmem:[#allocation11 + $0x170] sm:$0xff] }
  0xc4   :  { %v187_v37 = vadd.f32 %v186_v36, %v185_v31  ;;  %v188_v38 = vmul.f32 0.125, %v179_v35  ;;  %v320_v31 = vld [vmem:[#allocation11 + $0xf0] sm:$0xff]  ;;  %v3344_v36 = vpack.c.bf16 %v330_v34, %v327_v33 }
  0xc5   :  { %v3342_v35 = vpack.c.bf16 %v323_v32, %v320_v31  ;;  %v338_v51 = vld [vmem:[%s4472_s6] sm:$0x7] }
  0xc6   :  { %v189_v42 = vmul.f32 0.125, %v187_v37  ;;  %v190_v43 = vmul.f32 %v188_v38, %v188_v38  ;;  %3363 = vmatpush3.bf16.msra.mxu0 %v3362_v39  ;;  %v192_v55 = vsub.f32 %v4140_v7, %v188_v38  ;;  %v296_v7 = vld [vmem:[#allocation11 + $0x30] sm:$0xff]  ;;  %v326_v37 = vld [vmem:[#allocation11 + $0x120] sm:$0xff]  ;;  %v329_v38 = vld [vmem:[#allocation11 + $0x138] sm:$0xff] }
  0xc7   :  { %3364 = vmatprep.subr.bf16.mxu0 %v3920_v0  ;;  %v3326_v11 = vpack.c.bf16 %v299_v8, %v296_v7  ;;  %v333_v39 = vld [vmem:[#allocation11 + $0x158] sm:$0xff]  ;;  %v3346_v41 = vpack.c.bf16 %v329_v38, %v326_v37 }
  0xc8   :  { %v191_v44 = vsub.f32 %v189_v42, %v190_v43  ;;  %v3348_v42 = vpack.c.bf16 %v336_v40, %v333_v39  ;;  %v332_v43 = vld [vmem:[#allocation11 + $0x150] sm:$0xff] }
  0xca   :  { %v193_v48 = vadd.f32 1e-05, %v191_v44  ;;  %3366 = vmatpush3.bf16.msra.mxu0 %v3365_v45  ;;  %v335_v44 = vld [vmem:[#allocation11 + $0x168] sm:$0xff] }
  0xcb   :  { %3367 = vmatprep.subr.bf16.mxu0 %v3920_v0  ;;  %v3350_v45 = vpack.c.bf16 %v335_v44, %v332_v43 }
  0xcc   :  { %3630 = vrsqrt.f32 %v193_v48  ;;  %v340_v48 = vlaneseq }
  0xce   :  { %3369 = vmatpush3.bf16.msra.mxu0 %v3368_v49  ;;  %v4168_v49 = vshrl.u32 %v340_v48, 7 }
  0xcf   :  { %3370 = vmatprep.subr.bf16.mxu0 %v3920_v0 }
  0xd0   :  { %v4171_v50 = vsub.s32 1, %v4168_v49  ;;  %v350_v53 = vsub.s32 2, %v4168_v49 }
  0xd2   :  { %3372 = vmatpush3.bf16.msra.mxu0 %v3371_v52  ;;  %v4177_v52 = vsub.s32 0, %v4168_v49  ;;  %v347_v54 = vrot.slane %v338_v51, %v4171_v50  ;;  %v351_v60 = vrot.slane %v338_v51, %v350_v53 }
  0xd3   :  { %3373 = vmatprep.subr.bf16.mxu0 %v3920_v0 }
  0xd6   :  { %v3631_v57 = vpop.eup %3630  ;;  %3375 = vmatpush3.bf16.msra.mxu0 %v3374_v56 }
  0xd7   :  { %v195_v59 = vmul.f32 %v3631_v57, %v192_v55  ;;  %3159 = vmatprep.subr.mxu0 %v3922_v1  ;;  %v343_v57 = vrot.slane %v338_v51, %v4177_v52 }
  0xd9   :  { %v203_v3 = vmul.f32 %v2860_v58, %v195_v59 }
  0xdb   :  { %v211_v5 = vadd.f32 %v2861_v62, %v203_v3  ;;  %v4199_v3 = vld [vmem:[#allocation5] ss:$0 sm:$0xff] }
  0xdd   :  { %3092 = vmatmul.mubr.msk.f32.vlgmr.msra.gmra.mrb[0].mxu1 %vm172_vm1, %v211_v5 }
  0xde   :  { %3323 = vmatpush1.bf16.msra.mxu1 %v3322_v4  ;;  %419 = vmatprep.mubr.f32.mxu1 %v3922_v1 }
  0xdf   :  { %3325 = vmatprep.subr.bf16.mxu1 %v3324_v6 }
  0xe2   :  { %3327 = vmatpush1.bf16.msra.mxu1 %v3326_v11 }
  0xe3   :  { %3329 = vmatprep.subr.bf16.mxu1 %v3328_v12 }
  0xe6   :  { %3331 = vmatpush1.bf16.msra.mxu1 %v3330_v17 }
  0xe7   :  { %3333 = vmatprep.subr.bf16.mxu1 %v3332_v18 }
  0xea   :  { %3335 = vmatpush1.bf16.msra.mxu1 %v3334_v23 }
  0xeb   :  { %3337 = vmatprep.subr.bf16.mxu1 %v3336_v24 }
  0xee   :  { %3339 = vmatpush1.bf16.msra.mxu1 %v3338_v29 }
  0xef   :  { %3341 = vmatprep.subr.bf16.mxu1 %v3340_v30 }
  0xf2   :  { %3343 = vmatpush1.bf16.msra.mxu1 %v3342_v35 }
  0xf3   :  { %3345 = vmatprep.subr.bf16.mxu1 %v3344_v36 }
  0xf6   :  { %3347 = vmatpush1.bf16.msra.mxu1 %v3346_v41 }
  0xf7   :  { %3349 = vmatprep.subr.bf16.mxu1 %v3348_v42 }
  0xfa   :  { %3351 = vmatpush1.bf16.msra.mxu1 %v3350_v45 }
  0xfb   :  { %3129 = vmatprep.subr.mxu1 %v3922_v1 }
 0x1b0   :  { %v4160_v46 = vpop.f32.mrb[0].mxu1 }
 0x1b1   :  { %v3093_v47 = vpop.f32.mrb[1].mxu1  ;;  %420 = vmatmul.mubr.f32.vlgmr.msra.gmra.mrb[2].mxu1 %v4160_v46  ;;  %3127 = vmatmul.mubr.f32.vlgmr.msra.gmra.mrb[0].mxu0 %v4160_v46 }
 0x1b2   :  { %3131 = vmatprep.mubr.msk.f32.mxu1 %vm3921_vm0, %v3922_v1  ;;  %3161 = vmatprep.mubr.msk.f32.mxu0 %vm3921_vm0, %v3922_v1 }
 0x284   :  { %v421_v55 = vpop.f32.mrb[2].mxu1  ;;  %v492_v56 = vpop.f32.mrb[0].mxu0 }
 0x285   :  { %v423_v58 = vpop.f32.mrb[3].mxu1  ;;  %v3128_v59 = vpop.f32.mrb[1].mxu0  ;;  %v4186_v62 = vadd.f32 %v421_v55, %v343_v57  ;;  %v4189_v63 = vadd.f32 %v492_v56, %v351_v60 }
 0x286   :  { %v424_v61 = vadd.f32 %v423_v58, %v347_v54 }
 0x288   :  { %667 = vrot.lane.b32.xlu1 %v424_v61, %s3923_s25  ;;  %3130 = vmatpush3.xpose.msk.msra.mxu1 %vm172_vm1, %v424_v61 }
 0x289   :  { %3134 = vmatprep.subr.mxu1 %v3922_v1 }
 0x28b   :  { %3132 = vmatmul.mubr.msk.f32.vlgmr.msra.gmra.mrb[4].mxu1 %vm172_vm1, %v4186_v62 }
 0x28c   :  { %665 = vrot.lane.b32.xlu1 %v4186_v62, %s3923_s25  ;;  %3135 = vmatpush3.msra.mxu1 %v4189_v63 }
 0x28d   :  { %3136 = vmatprep.mubr.msk.f32.mxu1 %vm3921_vm0, %v3922_v1  ;;  %3139 = vmatprep.subr.mxu1 %v3922_v1 }
 0x2fa   :  { %v668_v15 = vpop.permute.xlu1 %667 }
 0x2fe   :  { %v666_v17 = vpop.permute.xlu1 %665 }
 0x35e   :  { %v568_v2 = vpop.f32.mrb[4].mxu1 }
 0x35f   :  { %v572_v4 = vmul.f32 0.17677669, %v568_v2  ;;  %v3133_v5 = vpop.f32.mrb[5].mxu1 }
 0x361   :  { %v579_v6 = vadd.f32 %v4199_v3, %v572_v4 }
 0x363   :  { %v581_v7 = vsel %vm580_vm2, %v579_v6, -inf }
 0x364   :  { %582 = vmax.xlane.f32.xlu0 %v581_v7 }
 0x3f1   :  { %v583_v8 = vpop.xlane.xlu0 %582 }
 0x3f2   :  { %v584_v9 = vsub.f32 %v579_v6, %v583_v8 }
 0x3f4   :  { %v585_v10 = vmul.f32 1.442695, %v584_v9 }
 0x3f6   :  { %3632 = vpow2.f32 %v585_v10 }
 0x400   :  { %v3633_v11 = vpop.eup %3632 }
 0x401   :  { %v587_v12 = vsel %vm580_vm2, %v3633_v11, 0.0 }
 0x402   :  { %588 = vadd.xlane.f32.xlu0 %v587_v12  ;;  %v1184_v12 = vld [vmem:[#allocation13] sm:$0xff] }
 0x48f   :  { %v589_v13 = vpop.xlane.xlu0 %588 }
 0x490   :  { %3634 = vrcp.f32 %v589_v13  ;;  %v1185_v13 = vld [vmem:[#allocation13 + $0x8] sm:$0xff] }
 0x49a   :  { %v3635_v14 = vpop.eup %3634 }
 0x49b   :  { %v591_v16 = vmul.f32 %v3635_v14, %v3633_v11  ;;  %v1186_v14 = vld [vmem:[#allocation13 + $0x10] sm:$0xff] }
 0x49d   :  { %3137 = vmatmul.mubr.msk.f32.vlgmr.msra.gmra.mrb[6].mxu1 %vm580_vm2, %v591_v16  ;;  %v1187_v16 = vld [vmem:[#allocation13 + $0x18] sm:$0xff] }
 0x49e   :  { %3140 = vmatpush3.xpose.msk.msra.mxu1 %vm172_vm1, %v668_v15  ;;  %3141 = vmatprep.mubr.msk.f32.mxu1 %vm3921_vm0, %v3922_v1  ;;  %v3377_v15 = vpack.c.bf16 %v1185_v13, %v1184_v12  ;;  %v1318_v12 = vld [vmem:[#allocation14 + $0x50] sm:$0xff] }
 0x49f   :  { %3144 = vmatprep.subr.mxu1 %v3922_v1 }
 0x4a1   :  { %3142 = vmatmul.mubr.msk.f32.vlgmr.msra.gmra.mrb[8].mxu1 %vm172_vm1, %v666_v17  ;;  %v3380_v17 = vpack.c.bf16 %v1187_v16, %v1186_v14  ;;  %v1321_v14 = vld [vmem:[#allocation14 + $0x68] sm:$0xff] }
 0x4a2   :  { %3146 = vmatprep.mubr.msk.f32.mxu1 %vm3921_vm0, %v3922_v1 }
 0x570   :  { %v4212_v18 = vpop.f32.mrb[6].mxu1 }
 0x571   :  { %v3138_v19 = vpop.f32.mrb[7].mxu1 }
 0x572   :  { %v1188_v19 = vld [vmem:[#allocation13 + $0x20] sm:$0xff] }
 0x574   :  { %v739_v20 = vpop.f32.mrb[8].mxu1 }
 0x575   :  { %v743_v21 = vmul.f32 0.17677669, %v739_v20  ;;  %v3143_v22 = vpop.f32.mrb[9].mxu1  ;;  %v1189_v20 = vld [vmem:[#allocation13 + $0x28] sm:$0xff] }
 0x576   :  { %v1190_v22 = vld [vmem:[#allocation13 + $0x30] sm:$0xff] }
 0x577   :  { %v744_v23 = vadd.f32 %v4199_v3, %v743_v21  ;;  %v3383_v21 = vpack.c.bf16 %v1189_v20, %v1188_v19  ;;  %v1325_v20 = vld [vmem:[#allocation14 + $0x88] sm:$0xff] }
 0x579   :  { %v745_v24 = vsel %vm580_vm2, %v744_v23, -inf }
 0x57a   :  { %746 = vmax.xlane.f32.xlu0 %v745_v24 }
 0x590   :  { %757 = vrot.lane.b32.xlu0 %v4189_v63, %s3923_s25 }
 0x594   :  { %835 = vrot.lane.b32.xlu0 %v424_v61, %s3924_s20 }
 0x598   :  { %833 = vrot.lane.b32.xlu0 %v4186_v62, %s3924_s20 }
 0x59c   :  { %1002 = vrot.lane.b32.xlu0 %v424_v61, %s3925_s19 }
 0x607   :  { %v747_v25 = vpop.xlane.xlu0 %746 }
 0x608   :  { %v748_v26 = vsub.f32 %v744_v23, %v747_v25  ;;  %v1191_v23 = vld [vmem:[#allocation13 + $0x38] sm:$0xff]  ;;  %v1192_v25 = vld [vmem:[#allocation13 + $0x40] sm:$0xff] }
 0x609   :  { %v3386_v24 = vpack.c.bf16 %v1191_v23, %v1190_v22  ;;  %v1324_v23 = vld [vmem:[#allocation14 + $0x80] sm:$0xff] }
 0x60a   :  { %v749_v27 = vmul.f32 1.442695, %v748_v26  ;;  %v1193_v26 = vld [vmem:[#allocation13 + $0x48] sm:$0xff] }
 0x60b   :  { %v758_v28 = vpop.permute.xlu0 %757 }
 0x60c   :  { %3636 = vpow2.f32 %v749_v27  ;;  %3145 = vmatpush3.msra.mxu1 %v758_v28  ;;  %v3389_v27 = vpack.c.bf16 %v1193_v26, %v1192_v25  ;;  %v1194_v28 = vld [vmem:[#allocation13 + $0x50] sm:$0xff]  ;;  %v1329_v25 = vld [vmem:[#allocation14 + $0xa8] sm:$0xff] }
 0x60d   :  { %3149 = vmatprep.subr.mxu1 %v3922_v1 }
 0x60f   :  { %v836_v29 = vpop.permute.xlu0 %835 }
 0x613   :  { %v834_v30 = vpop.permute.xlu0 %833 }
 0x616   :  { %v3637_v31 = vpop.eup %3636 }
 0x617   :  { %v1003_v32 = vpop.permute.xlu0 %1002  ;;  %v751_v33 = vsel %vm580_vm2, %v3637_v31, 0.0 }
 0x618   :  { %752 = vadd.xlane.f32.xlu1 %v751_v33  ;;  %3160 = vmatpush3.xpose.msk.msra.mxu0 %vm172_vm1, %v1003_v32  ;;  %v1197_v32 = vld [vmem:[#allocation13 + $0x68] sm:$0xff] }
 0x619   :  { %3376 = vmatprep.subr.bf16.mxu0 %v3920_v0 }
 0x629   :  { %1000 = vrot.lane.b32.xlu1 %v4186_v62, %s3925_s19 }
 0x6a5   :  { %v753_v34 = vpop.xlane.xlu1 %752 }
 0x6a6   :  { %3638 = vrcp.f32 %v753_v34  ;;  %v1198_v34 = vld [vmem:[#allocation13 + $0x70] sm:$0xff] }
 0x6a9   :  { %v1001_v35 = vpop.permute.xlu1 %1000 }
 0x6aa   :  { %3162 = vmatmul.mubr.msk.f32.vlgmr.msra.gmra.mrb[2].mxu0 %vm172_vm1, %v1001_v35  ;;  %v1199_v35 = vld [vmem:[#allocation13 + $0x78] sm:$0xff] }
 0x6ab   :  { %3201 = vmatprep.mubr.msk.f32.mxu0 %vm3921_vm0, %v3922_v1  ;;  %3378 = vmatpush3.bf16.msra.mxu0 %v3377_v15  ;;  %v1323_v15 = vld [vmem:[#allocation14 + $0x78] sm:$0xff] }
 0x6ac   :  { %3379 = vmatprep.subr.bf16.mxu0 %v3920_v0  ;;  %v3412_v16 = vpack.c.bf16 %v1323_v15, %v1321_v14  ;;  %v1433_v15 = vld [vmem:[#allocation16 + $0x40] sm:$0xff] }
 0x6af   :  { %3381 = vmatpush3.bf16.msra.mxu0 %v3380_v17  ;;  %v1320_v17 = vld [vmem:[#allocation14 + $0x60] sm:$0xff] }
 0x6b0   :  { %v3639_v36 = vpop.eup %3638  ;;  %3382 = vmatprep.subr.bf16.mxu0 %v3920_v0 }
 0x6b1   :  { %v755_v37 = vmul.f32 %v3639_v36, %v3637_v31  ;;  %v1196_v31 = vld [vmem:[#allocation13 + $0x60] sm:$0xff]  ;;  %v3398_v36 = vpack.c.bf16 %v1199_v35, %v1198_v34 }
 0x6b2   :  { %v3395_v33 = vpack.c.bf16 %v1197_v32, %v1196_v31  ;;  %v1333_v31 = vld [vmem:[#allocation14 + $0xc8] sm:$0xff]  ;;  %v1335_v32 = vld [vmem:[#allocation14 + $0xd8] sm:$0xff]  ;;  %v1332_v35 = vld [vmem:[#allocation14 + $0xc0] sm:$0xff] }
 0x6b3   :  { %3147 = vmatmul.mubr.msk.f32.vlgmr.msra.gmra.mrb[10].mxu1 %vm580_vm2, %v755_v37  ;;  %3384 = vmatpush3.bf16.msra.mxu0 %v3383_v21  ;;  %v1327_v21 = vld [vmem:[#allocation14 + $0x98] sm:$0xff]  ;;  %v3424_v34 = vpack.c.bf16 %v1335_v32, %v1333_v31 }
 0x6b4   :  { %3150 = vmatpush3.xpose.msk.msra.mxu1 %vm172_vm1, %v836_v29  ;;  %3151 = vmatprep.mubr.msk.f32.mxu1 %vm3921_vm0, %v3922_v1  ;;  %v1195_v29 = vld [vmem:[#allocation13 + $0x58] sm:$0xff]  ;;  %v3416_v22 = vpack.c.bf16 %v1327_v21, %v1325_v20  ;;  %v1435_v21 = vld [vmem:[#allocation16 + $0x50] sm:$0xff] }
 0x6b5   :  { %3154 = vmatprep.subr.mxu1 %v3922_v1  ;;  %3385 = vmatprep.subr.bf16.mxu0 %v3920_v0 }
 0x6b7   :  { %3152 = vmatmul.mubr.msk.f32.vlgmr.msra.gmra.mrb[12].mxu1 %vm172_vm1, %v834_v30  ;;  %3387 = vmatpush3.bf16.msra.mxu0 %v3386_v24  ;;  %v3392_v30 = vpack.c.bf16 %v1195_v29, %v1194_v28  ;;  %v1326_v24 = vld [vmem:[#allocation14 + $0x90] sm:$0xff]  ;;  %v1328_v28 = vld [vmem:[#allocation14 + $0xa0] sm:$0xff] }
 0x6b8   :  { %3156 = vmatprep.mubr.msk.f32.mxu1 %vm3921_vm0, %v3922_v1  ;;  %3388 = vmatprep.subr.bf16.mxu0 %v3920_v0  ;;  %v3418_v26 = vpack.c.bf16 %v1326_v24, %v1324_v23  ;;  %v1330_v29 = vld [vmem:[#allocation14 + $0xb0] sm:$0xff]  ;;  %v1453_v23 = vld [vmem:[#allocation16 + $0xe0] sm:$0xff]  ;;  %v1454_v24 = vld [vmem:[#allocation16 + $0xe8] sm:$0xff] }
 0x6bb   :  { %3390 = vmatpush3.bf16.msra.mxu0 %v3389_v27  ;;  %v1331_v27 = vld [vmem:[#allocation14 + $0xb8] sm:$0xff] }
 0x6bc   :  { %3391 = vmatprep.subr.bf16.mxu0 %v3920_v0 }
 0x6bf   :  { %3393 = vmatpush3.bf16.msra.mxu0 %v3392_v30  ;;  %v3420_v30 = vpack.c.bf16 %v1331_v27, %v1329_v25 }
 0x6c0   :  { %3394 = vmatprep.subr.bf16.mxu0 %v3920_v0 }
 0x6c3   :  { %3396 = vmatpush3.bf16.msra.mxu0 %v3395_v33  ;;  %v3422_v33 = vpack.c.bf16 %v1330_v29, %v1328_v28 }
 0x6c4   :  { %3397 = vmatprep.subr.bf16.mxu0 %v3920_v0 }
 0x6c7   :  { %3399 = vmatpush3.bf16.msra.mxu0 %v3398_v36  ;;  %v1334_v36 = vld [vmem:[#allocation14 + $0xd0] sm:$0xff] }
 0x77d   :  { %v1074_v38 = vpop.f32.mrb[2].mxu0 }
 0x77e   :  { %v1078_v39 = vmul.f32 0.17677669, %v1074_v38  ;;  %v3163_v40 = vpop.f32.mrb[3].mxu0 }
 0x780   :  { %v1079_v41 = vadd.f32 %v4199_v3, %v1078_v39 }
 0x782   :  { %v1080_v42 = vsel %vm580_vm2, %v1079_v41, -inf }
 0x783   :  { %1081 = vmax.xlane.f32.xlu1 %v1080_v42 }
 0x786   :  { %v829_v43 = vpop.f32.mrb[10].mxu1 }
 0x787   :  { %v3148_v44 = vpop.f32.mrb[11].mxu1 }
 0x78a   :  { %v907_v45 = vpop.f32.mrb[12].mxu1 }
 0x78b   :  { %v911_v47 = vmul.f32 0.17677669, %v907_v45  ;;  %v3153_v48 = vpop.f32.mrb[13].mxu1 }
 0x78c   :  { %v1309_v48 = vld [vmem:[#allocation14 + $0x8] sm:$0xff] }
 0x78d   :  { %v912_v51 = vadd.f32 %v4199_v3, %v911_v47 }
 0x78f   :  { %v913_v54 = vsel %vm580_vm2, %v912_v51, -inf }
 0x790   :  { %914 = vmax.xlane.f32.xlu0 %v913_v54  ;;  %v1308_v54 = vld [vmem:[#allocation14] sm:$0xff] }
 0x794   :  { %1091 = vrot.lane.b32.xlu1 %v4189_v63, %s3925_s19 }
 0x810   :  { %v1082_v55 = vpop.xlane.xlu1 %1081 }
 0x811   :  { %v1083_v56 = vsub.f32 %v1079_v41, %v1082_v55 }
 0x813   :  { %v1084_v57 = vmul.f32 1.442695, %v1083_v56  ;;  %v1310_v56 = vld [vmem:[#allocation14 + $0x10] sm:$0xff] }
 0x814   :  { %v1092_v11 = vpop.permute.xlu1 %1091 }
 0x815   :  { %3640 = vpow2.f32 %v1084_v57  ;;  %v1313_v57 = vld [vmem:[#allocation14 + $0x28] sm:$0xff] }
 0x81d   :  { %v915_v58 = vpop.xlane.xlu0 %914 }
 0x81e   :  { %v916_v59 = vsub.f32 %v912_v51, %v915_v58  ;;  %v1311_v51 = vld [vmem:[#allocation14 + $0x18] sm:$0xff] }
 0x81f   :  { %v3641_v60 = vpop.eup %3640  ;;  %v3400_v55 = vpack.c.bf16 %v1311_v51, %v1309_v48  ;;  %v1315_v58 = vld [vmem:[#allocation14 + $0x38] sm:$0xff]  ;;  %v1426_v51 = vld [vmem:[#allocation16 + $0x8] sm:$0xff] }
 0x820   :  { %v917_v61 = vmul.f32 1.442695, %v916_v59  ;;  %v1086_v62 = vsel %vm580_vm2, %v3641_v60, 0.0  ;;  %v3402_v59 = vpack.c.bf16 %v1310_v56, %v1308_v54  ;;  %v1443_v54 = vld [vmem:[#allocation16 + $0x90] sm:$0xff] }
 0x821   :  { %1087 = vadd.xlane.f32.xlu0 %v1086_v62  ;;  %v1314_v62 = vld [vmem:[#allocation14 + $0x30] sm:$0xff] }
 0x822   :  { %3642 = vpow2.f32 %v917_v61  ;;  %v1312_v61 = vld [vmem:[#allocation14 + $0x20] sm:$0xff] }
 0x82c   :  { %v3643_v2 = vpop.eup %3642 }
 0x82d   :  { %v919_v4 = vsel %vm580_vm2, %v3643_v2, 0.0 }
 0x82e   :  { %920 = vadd.xlane.f32.xlu0 %v919_v4 }
 0x844   :  { %924 = vrot.lane.b32.xlu0 %v4189_v63, %s3924_s20 }
 0x848   :  { %1168 = vrot.lane.b32.xlu0 %v829_v43, %s3925_s19 }
 0x8ae   :  { %v1088_v5 = vpop.xlane.xlu0 %1087 }
 0x8bb   :  { %v921_v6 = vpop.xlane.xlu0 %920 }
 0x8bc   :  { %3644 = vrcp.f32 %v921_v6 }
 0x8bd   :  { %3646 = vrcp.f32 %v1088_v5 }
 0x8bf   :  { %v925_v7 = vpop.permute.xlu0 %924 }
 0x8c0   :  { %3155 = vmatpush3.msra.mxu1 %v925_v7 }
 0x8c1   :  { %3164 = vmatprep.subr.mxu1 %v3922_v1 }
 0x8c3   :  { %v1169_v41 = vpop.permute.xlu0 %1168 }
 0x8c4   :  { %v1179_v43 = vsel %vm172_vm1, %v4212_v18, %v1169_v41  ;;  %v3406_v18 = vpack.c.bf16 %v1314_v62, %v1312_v61  ;;  %v1336_v41 = vld [vmem:[#allocation14 + $0xe0] sm:$0xff]  ;;  %v1446_v61 = vld [vmem:[#allocation16 + $0xa8] sm:$0xff] }
 0x8c6   :  { %v3645_v8 = vpop.eup %3644 }
 0x8c7   :  { %v923_v9 = vmul.f32 %v3645_v8, %v3643_v2  ;;  %v3647_v10 = vpop.eup %3646  ;;  %v2876_v2 = vld [vmem:[%s4474_s8] ss:$0 sm:$0xff] }
 0x8c8   :  { %v1090_v63 = vmul.f32 %v3647_v10, %v3641_v60  ;;  %v3404_v60 = vpack.c.bf16 %v1315_v58, %v1313_v57  ;;  %v1319_v10 = vld [vmem:[#allocation14 + $0x58] sm:$0xff]  ;;  %v1427_v58 = vld [vmem:[#allocation16 + $0x10] sm:$0xff] }
 0x8c9   :  { %3157 = vmatmul.mubr.msk.f32.vlgmr.msra.gmra.mrb[14].mxu1 %vm580_vm2, %v923_v9  ;;  %v1317_v9 = vld [vmem:[#allocation14 + $0x48] sm:$0xff] }
 0x8ca   :  { %3165 = vmatpush3.msra.mxu1 %v1092_v11  ;;  %3166 = vmatprep.mubr.msk.f32.mxu1 %vm3921_vm0, %v3922_v1  ;;  %v3408_v11 = vpack.c.bf16 %v1319_v10, %v1317_v9  ;;  %v1431_v10 = vld [vmem:[#allocation16 + $0x30] sm:$0xff] }
 0x8cb   :  { %3401 = vmatprep.subr.bf16.mxu1 %v3400_v55  ;;  %v1444_v55 = vld [vmem:[#allocation16 + $0x98] sm:$0xff] }
 0x8cc   :  { %v3436_v57 = vpack.c.bf16 %v1444_v55, %v1443_v54  ;;  %v1340_v54 = vld [vmem:[%s4478_s12] sm:$0x3] }
 0x8cd   :  { %3167 = vmatmul.mubr.msk.f32.vlgmr.msra.gmra.mrb[16].mxu1 %vm580_vm2, %v1090_v63  ;;  %v1316_v63 = vld [vmem:[#allocation14 + $0x40] sm:$0xff]  ;;  %v1345_v55 = vrot.slane %v1340_v54, %v4177_v52 }
 0x8ce   :  { %1416 = vmatprep.mubr.f32.mxu1 %v3922_v1  ;;  %3403 = vmatpush1.bf16.msra.mxu1 %v3402_v59  ;;  %v3410_v13 = vpack.c.bf16 %v1318_v12, %v1316_v63  ;;  %v1428_v59 = vld [vmem:[#allocation16 + $0x18] sm:$0xff]  ;;  %v1449_v63 = vld [vmem:[#allocation16 + $0xc0] sm:$0xff]  ;;  %v1450_v12 = vld [vmem:[#allocation16 + $0xc8] sm:$0xff] }
 0x8cf   :  { %3405 = vmatprep.subr.bf16.mxu1 %v3404_v60  ;;  %v1445_v60 = vld [vmem:[#allocation16 + $0xa0] sm:$0xff]  ;;  %v3438_v62 = vpack.c.bf16 %v1428_v59, %v1427_v58  ;;  %v3448_v14 = vpack.c.bf16 %v1450_v12, %v1449_v63  ;;  %v1572_v63 = vld [vmem:[#allocation11 + $0x1b8] sm:$0xff]  ;;  %v1575_v12 = vld [vmem:[#allocation11 + $0x1d0] sm:$0xff] }
 0x8d2   :  { %3407 = vmatpush1.bf16.msra.mxu1 %v3406_v18  ;;  %v3440_v18 = vpack.c.bf16 %v1446_v61, %v1445_v60 }
 0x8d3   :  { %3409 = vmatprep.subr.bf16.mxu1 %v3408_v11  ;;  %v1432_v11 = vld [vmem:[#allocation16 + $0x38] sm:$0xff] }
 0x8d6   :  { %3411 = vmatpush1.bf16.msra.mxu1 %v3410_v13  ;;  %v3446_v13 = vpack.c.bf16 %v1432_v11, %v1431_v10 }
 0x8d7   :  { %3413 = vmatprep.subr.bf16.mxu1 %v3412_v16  ;;  %v1434_v16 = vld [vmem:[#allocation16 + $0x48] sm:$0xff] }
 0x99c   :  { %v996_v37 = vpop.f32.mrb[14].mxu1 }
 0x99d   :  { %1172 = vrot.lane.b32.xlu0 %v996_v37, %s3924_s20  ;;  %v3158_v38 = vpop.f32.mrb[15].mxu1  ;;  %v1337_v37 = vld [vmem:[#allocation14 + $0xe8] sm:$0xff] }
 0x99e   :  { %v1339_v38 = vld [vmem:[#allocation14 + $0xf8] sm:$0xff] }
 0x9a0   :  { %v1163_v39 = vpop.f32.mrb[16].mxu1 }
 0x9a1   :  { %1176 = vrot.lane.b32.xlu1 %v1163_v39, %s3923_s25  ;;  %v3168_v40 = vpop.f32.mrb[17].mxu1  ;;  %v3426_v39 = vpack.c.bf16 %v1334_v36, %v1332_v35  ;;  %v2877_v36 = vld [vmem:[%s4475_s9] ss:$0 sm:$0xff] }
 0x9a2   :  { %v3428_v40 = vpack.c.bf16 %v1339_v38, %v1337_v37  ;;  %v2878_v38 = vld [vmem:[%s4476_s10] ss:$0 sm:$0xff] }
 0xa0f   :  { %v1173_v42 = vpop.permute.xlu0 %1172 }
 0xa10   :  { %v1181_v44 = vsel %vm1180_vm3, %v1179_v43, %v1173_v42  ;;  %v1338_v42 = vld [vmem:[#allocation14 + $0xf0] sm:$0xff] }
 0xa11   :  { %v3430_v43 = vpack.c.bf16 %v1338_v42, %v1336_v41  ;;  %v1437_v41 = vld [vmem:[#allocation16 + $0x60] sm:$0xff]  ;;  %v1438_v42 = vld [vmem:[#allocation16 + $0x68] sm:$0xff] }
 0xa13   :  { %v1177_v45 = vpop.permute.xlu1 %1176 }
 0xa14   :  { %v1183_v47 = vsel %vm1182_vm4, %v1181_v44, %v1177_v45  ;;  %v1441_v44 = vld [vmem:[#allocation16 + $0x80] sm:$0xff]  ;;  %v1442_v45 = vld [vmem:[#allocation16 + $0x88] sm:$0xff] }
 0xa15   :  { %3202 = vmatmul.mubr.f32.vlgmr.msra.gmra.mrb[4].mxu0 %v1183_v47  ;;  %v1425_v47 = vld [vmem:[#allocation16] sm:$0xff]  ;;  %v3432_v48 = vpack.c.bf16 %v1442_v45, %v1441_v44  ;;  %v1456_v44 = vld [vmem:[#allocation16 + $0xf8] sm:$0xff] }
 0xa16   :  { %v3434_v56 = vpack.c.bf16 %v1426_v51, %v1425_v47  ;;  %v1439_v47 = vld [vmem:[#allocation16 + $0x70] sm:$0xff] }
 0xa17   :  { %3433 = vmatprep.subr.bf16.mxu0 %v3432_v48  ;;  %v1440_v48 = vld [vmem:[#allocation16 + $0x78] sm:$0xff] }
 0xa18   :  { %3435 = vmatpush3.bf16.msra.mxu0 %v3434_v56  ;;  %v3462_v51 = vpack.c.bf16 %v1440_v48, %v1439_v47  ;;  %v1349_v56 = vrot.slane %v1340_v54, %v4171_v50  ;;  %v1589_v48 = vld [vmem:[#allocation11 + $0x240] sm:$0xff]  ;;  %v1591_v54 = vld [vmem:[#allocation11 + $0x250] sm:$0xff] }
 0xa19   :  { %3437 = vmatprep.subr.bf16.mxu0 %v3436_v57 }
 0xa1c   :  { %3439 = vmatpush3.bf16.msra.mxu0 %v3438_v62 }
 0xa1d   :  { %3441 = vmatprep.subr.bf16.mxu0 %v3440_v18  ;;  %v1566_v18 = vld [vmem:[#allocation11 + $0x188] sm:$0xff] }
 0xae8   :  { %v1273_v4 = vpop.f32.mrb[4].mxu0 }
 0xae9   :  { %v1274_v5 = vadd.f32 %v2876_v2, %v1273_v4  ;;  %v3203_v6 = vpop.f32.mrb[5].mxu0  ;;  %v1429_v2 = vld [vmem:[#allocation16 + $0x20] sm:$0xff]  ;;  %v1430_v4 = vld [vmem:[#allocation16 + $0x28] sm:$0xff] }
 0xaea   :  { %v1448_v6 = vld [vmem:[#allocation16 + $0xb8] sm:$0xff] }
 0xaeb   :  { %v4273_v7 = vadd.f32 %v1274_v5, %v4160_v46  ;;  %v1322_v46 = vld [vmem:[#allocation14 + $0x70] sm:$0xff] }
 0xaec   :  { %v3414_v19 = vpack.c.bf16 %v1322_v46, %v1320_v17  ;;  %v1447_v5 = vld [vmem:[#allocation16 + $0xb0] sm:$0xff]  ;;  %v1452_v46 = vld [vmem:[#allocation16 + $0xd8] sm:$0xff] }
 0xaed   :  { %1280 = vadd.xlane.f32.xlu0 %v4273_v7  ;;  %v1284_v8 = vmul.f32 %v4273_v7, %v4273_v7  ;;  %v3444_v9 = vpack.c.bf16 %v1448_v6, %v1447_v5  ;;  %v1451_v17 = vld [vmem:[#allocation16 + $0xd0] sm:$0xff]  ;;  %v1568_v6 = vld [vmem:[#allocation11 + $0x198] sm:$0xff] }
 0xaee   :  { %3415 = vmatpush1.bf16.msra.mxu1 %v3414_v19  ;;  %v3450_v19 = vpack.c.bf16 %v1434_v16, %v1433_v15  ;;  %v3452_v20 = vpack.c.bf16 %v1452_v46, %v1451_v17  ;;  %v2879_v15 = vld [vmem:[%s4480_s14] ss:$0 sm:$0xff] }
 0xaef   :  { %1285 = vadd.xlane.f32.xlu1 %v1284_v8  ;;  %3417 = vmatprep.subr.bf16.mxu1 %v3416_v22  ;;  %v3442_v8 = vpack.c.bf16 %v1430_v4, %v1429_v2  ;;  %v1436_v22 = vld [vmem:[#allocation16 + $0x58] sm:$0xff]  ;;  %v1569_v2 = vld [vmem:[#allocation11 + $0x1a0] sm:$0xff] }
 0xaf0   :  { %v3454_v25 = vpack.c.bf16 %v1436_v22, %v1435_v21  ;;  %v1565_v4 = vld [vmem:[#allocation11 + $0x180] sm:$0xff]  ;;  %v3464_v5 = vpack.c.bf16 %v1569_v2, %v1566_v18  ;;  %v1571_v21 = vld [vmem:[#allocation11 + $0x1b0] sm:$0xff]  ;;  %v1574_v22 = vld [vmem:[#allocation11 + $0x1c8] sm:$0xff] }
 0xaf1   :  { %3443 = vmatpush3.bf16.msra.mxu0 %v3442_v8  ;;  %v1567_v8 = vld [vmem:[#allocation11 + $0x190] sm:$0xff]  ;;  %v3466_v10 = vpack.c.bf16 %v1568_v6, %v1565_v4  ;;  %v1597_v18 = vld [vmem:[#allocation11 + $0x280] sm:$0xff]  ;;  %v1600_v4 = vld [vmem:[#allocation11 + $0x298] sm:$0xff] }
 0xaf2   :  { %3419 = vmatpush1.bf16.msra.mxu1 %v3418_v26  ;;  %3445 = vmatprep.subr.bf16.mxu0 %v3444_v9  ;;  %v3456_v26 = vpack.c.bf16 %v1454_v24, %v1453_v23  ;;  %v1570_v9 = vld [vmem:[#allocation11 + $0x1a8] sm:$0xff]  ;;  %v1573_v23 = vld [vmem:[#allocation11 + $0x1c0] sm:$0xff]  ;;  %v3470_v24 = vpack.c.bf16 %v1574_v22, %v1571_v21  ;;  %v1612_v22 = vld [vmem:[#allocation11 + $0x2f8] sm:$0xff] }
 0xaf3   :  { %3421 = vmatprep.subr.bf16.mxu1 %v3420_v30  ;;  %v3497_v11 = vpack.c.bf16 %v1570_v9, %v1567_v8  ;;  %v1605_v6 = vld [vmem:[#allocation11 + $0x2c0] sm:$0xff]  ;;  %v3512_v8 = vpack.c.bf16 %v1600_v4, %v1597_v18 }
 0xaf4   :  { %v1609_v21 = vld [vmem:[#allocation11 + $0x2e0] sm:$0xff] }
 0xaf5   :  { %3447 = vmatpush3.bf16.msra.mxu0 %v3446_v13  ;;  %v3468_v13 = vpack.c.bf16 %v1575_v12, %v1572_v63  ;;  %v1603_v63 = vld [vmem:[#allocation11 + $0x2b0] sm:$0xff]  ;;  %v1606_v12 = vld [vmem:[#allocation11 + $0x2c8] sm:$0xff] }
 0xaf6   :  { %3423 = vmatpush1.bf16.msra.mxu1 %v3422_v33  ;;  %3449 = vmatprep.subr.bf16.mxu0 %v3448_v14 }
 0xaf7   :  { %3425 = vmatprep.subr.bf16.mxu1 %v3424_v34 }
 0xaf9   :  { %3451 = vmatpush3.bf16.msra.mxu0 %v3450_v19 }
 0xafa   :  { %3427 = vmatpush1.bf16.msra.mxu1 %v3426_v39  ;;  %3453 = vmatprep.subr.bf16.mxu0 %v3452_v20 }
 0xafb   :  { %3429 = vmatprep.subr.bf16.mxu1 %v3428_v40 }
 0xafd   :  { %3455 = vmatpush3.bf16.msra.mxu0 %v3454_v25  ;;  %v1576_v25 = vld [vmem:[#allocation11 + $0x1d8] sm:$0xff] }
 0xafe   :  { %3431 = vmatpush1.bf16.msra.mxu1 %v3430_v43  ;;  %3457 = vmatprep.subr.bf16.mxu0 %v3456_v26  ;;  %v3458_v43 = vpack.c.bf16 %v1438_v42, %v1437_v41  ;;  %v3500_v26 = vpack.c.bf16 %v1576_v25, %v1573_v23  ;;  %v1585_v41 = vld [vmem:[#allocation11 + $0x220] sm:$0xff] }
 0xaff   :  { %3465 = vmatprep.subr.bf16.mxu1 %v3464_v5  ;;  %v1602_v5 = vld [vmem:[#allocation11 + $0x2a8] sm:$0xff] }
 0xb00   :  { %v3488_v9 = vpack.c.bf16 %v1605_v6, %v1602_v5 }
 0xb01   :  { %3459 = vmatpush3.bf16.msra.mxu0 %v3458_v43  ;;  %v1588_v43 = vld [vmem:[#allocation11 + $0x238] sm:$0xff] }
 0xb7a   :  { %v1281_v27 = vpop.xlane.xlu0 %1280 }
 0xb7b   :  { %v1283_v28 = vmul.f32 0.0078125, %v1281_v27  ;;  %v1578_v27 = vld [vmem:[#allocation11 + $0x1e8] sm:$0xff] }
 0xb7c   :  { %v1286_v29 = vpop.xlane.xlu1 %1285 }
 0xb7d   :  { %v1288_v30 = vmul.f32 %v1283_v28, %v1283_v28  ;;  %v1287_v31 = vmul.f32 0.0078125, %v1286_v29  ;;  %v1290_v34 = vsub.f32 %v4273_v7, %v1283_v28  ;;  %v1455_v7 = vld [vmem:[#allocation16 + $0xf0] sm:$0xff]  ;;  %v1581_v28 = vld [vmem:[#allocation11 + $0x200] sm:$0xff] }
 0xb7e   :  { %v3460_v45 = vpack.c.bf16 %v1456_v44, %v1455_v7  ;;  %v3472_v29 = vpack.c.bf16 %v1581_v28, %v1578_v27  ;;  %v3506_v7 = vpack.c.bf16 %v1588_v43, %v1585_v41  ;;  %v1590_v44 = vld [vmem:[#allocation11 + $0x248] sm:$0xff] }
 0xb7f   :  { %v1289_v32 = vsub.f32 %v1287_v31, %v1288_v30  ;;  %v1577_v30 = vld [vmem:[#allocation11 + $0x1e0] sm:$0xff]  ;;  %v1580_v31 = vld [vmem:[#allocation11 + $0x1f8] sm:$0xff] }
 0xb80   :  { %3461 = vmatprep.subr.bf16.mxu0 %v3460_v45  ;;  %v1593_v45 = vld [vmem:[#allocation11 + $0x260] sm:$0xff] }
 0xb81   :  { %v1291_v33 = vadd.f32 1e-05, %v1289_v32  ;;  %3463 = vmatpush3.bf16.msra.mxu0 %v3462_v51  ;;  %v1579_v32 = vld [vmem:[#allocation11 + $0x1f0] sm:$0xff]  ;;  %v3480_v47 = vpack.c.bf16 %v1593_v45, %v1590_v44  ;;  %v1592_v51 = vld [vmem:[#allocation11 + $0x258] sm:$0xff] }
 0xb82   :  { %3496 = vmatprep.subr.bf16.mxu0 %v3920_v0 }
 0xb83   :  { %3648 = vrsqrt.f32 %v1291_v33  ;;  %v3474_v33 = vpack.c.bf16 %v1580_v31, %v1577_v30 }
 0xb8d   :  { %v3649_v35 = vpop.eup %3648 }
 0xb8e   :  { %v1293_v37 = vmul.f32 %v3649_v35, %v1290_v34  ;;  %v1582_v34 = vld [vmem:[#allocation11 + $0x208] sm:$0xff] }
 0xb8f   :  { %v3503_v35 = vpack.c.bf16 %v1582_v34, %v1579_v32  ;;  %v2880_v34 = vld [vmem:[%s4481_s15] ss:$0 sm:$0xff] }
 0xb90   :  { %v1300_v39 = vmul.f32 %v2877_v36, %v1293_v37  ;;  %v1584_v36 = vld [vmem:[#allocation11 + $0x218] sm:$0xff]  ;;  %v1587_v37 = vld [vmem:[#allocation11 + $0x230] sm:$0xff] }
 0xb92   :  { %v1307_v40 = vadd.f32 %v2878_v38, %v1300_v39  ;;  %v3476_v38 = vpack.c.bf16 %v1587_v37, %v1584_v36  ;;  %v1583_v39 = vld [vmem:[#allocation11 + $0x210] sm:$0xff] }
 0xb93   :  { %v2881_v36 = vld [vmem:[%s4482_s16] ss:$0 sm:$0xff] }
 0xb94   :  { %1417 = vmatmul.mubr.f32.vlgmr.msra.gmra.mrb[18].mxu1 %v1307_v40 }
 0xb95   :  { %1695 = vmatprep.mubr.f32.mxu1 %v3922_v1  ;;  %3467 = vmatpush1.bf16.msra.mxu1 %v3466_v10  ;;  %v1601_v10 = vld [vmem:[#allocation11 + $0x2a0] sm:$0xff] }
 0xb96   :  { %3469 = vmatprep.subr.bf16.mxu1 %v3468_v13  ;;  %v1608_v13 = vld [vmem:[#allocation11 + $0x2d8] sm:$0xff] }
 0xb99   :  { %3471 = vmatpush1.bf16.msra.mxu1 %v3470_v24  ;;  %v3518_v24 = vpack.c.bf16 %v1612_v22, %v1609_v21 }
 0xb9a   :  { %3473 = vmatprep.subr.bf16.mxu1 %v3472_v29 }
 0xb9d   :  { %3475 = vmatpush1.bf16.msra.mxu1 %v3474_v33 }
 0xb9e   :  { %3477 = vmatprep.subr.bf16.mxu1 %v3476_v38 }
 0xc67   :  { %v1418_v57 = vpop.f32.mrb[18].mxu1 }
 0xc68   :  { %v1419_v58 = vadd.f32 %v1418_v57, %v1345_v55  ;;  %v1420_v59 = vpop.f32.mrb[19].mxu1  ;;  %v3482_v55 = vpack.c.bf16 %v1592_v51, %v1589_v48  ;;  %v1596_v57 = vld [vmem:[#allocation11 + $0x278] sm:$0xff] }
 0xc69   :  { %v1421_v60 = vadd.f32 %v1420_v59, %v1349_v56  ;;  %v1594_v56 = vld [vmem:[#allocation11 + $0x268] sm:$0xff] }
 0xc6a   :  { %v1423_v62 = vmax.f32 %v1419_v58, 0.0  ;;  %v1599_v58 = vld [vmem:[#allocation11 + $0x290] sm:$0xff]  ;;  %v3509_v59 = vpack.c.bf16 %v1594_v56, %v1591_v54 }
 0xc6b   :  { %v1424_v61 = vmax.f32 %v1421_v60, 0.0  ;;  %v3484_v60 = vpack.c.bf16 %v1599_v58, %v1596_v57 }
 0xc6d   :  { %1528 = vmatprep.mubr.f32.mxu0 %v1424_v61  ;;  %v1595_v61 = vld [vmem:[#allocation11 + $0x270] sm:$0xff] }
 0xc6e   :  { %1529 = vmatmul.mubr.f32.vlgmr.msra.gmra.mrb[6].mxu0 %v1423_v62  ;;  %v1598_v62 = vld [vmem:[#allocation11 + $0x288] sm:$0xff] }
 0xc6f   :  { %3236 = vmatprep.mubr.msk.f32.mxu0 %vm3921_vm0, %v3922_v1  ;;  %3498 = vmatpush3.bf16.msra.mxu0 %v3497_v11  ;;  %v3486_v2 = vpack.c.bf16 %v1598_v62, %v1595_v61  ;;  %v1604_v11 = vld [vmem:[#allocation11 + $0x2b8] sm:$0xff] }
 0xc70   :  { %3499 = vmatprep.subr.bf16.mxu0 %v3920_v0 }
 0xc73   :  { %3501 = vmatpush3.bf16.msra.mxu0 %v3500_v26 }
 0xc74   :  { %3502 = vmatprep.subr.bf16.mxu0 %v3920_v0 }
 0xc77   :  { %3504 = vmatpush3.bf16.msra.mxu0 %v3503_v35 }
 0xc78   :  { %3505 = vmatprep.subr.bf16.mxu0 %v3920_v0 }
 0xc7b   :  { %3507 = vmatpush3.bf16.msra.mxu0 %v3506_v7 }
 0xc7c   :  { %3508 = vmatprep.subr.bf16.mxu0 %v3920_v0 }
 0xc7f   :  { %3510 = vmatpush3.bf16.msra.mxu0 %v3509_v59 }
 0xc80   :  { %3511 = vmatprep.subr.bf16.mxu0 %v3920_v0 }
 0xc83   :  { %3513 = vmatpush3.bf16.msra.mxu0 %v3512_v8 }
 0xc84   :  { %3514 = vmatprep.subr.bf16.mxu0 %v3920_v0 }
 0xd41   :  { %v2995_v14 = vpop.f32.mrb[6].mxu0 }
 0xd42   :  { %v2996_v16 = vpop.f32.mrb[7].mxu0 }
 0xd43   :  { %v2997_v17 = vadd.f32 %v2996_v16, %v2995_v14  ;;  %v1611_v14 = vld [vmem:[#allocation11 + $0x2f0] sm:$0xff]  ;;  %v3515_v16 = vpack.c.bf16 %v1606_v12, %v1603_v63 }
 0xd45   :  { %v1531_v46 = vadd.f32 %v2997_v17, %v2879_v15  ;;  %v3490_v15 = vpack.c.bf16 %v1604_v11, %v1601_v10  ;;  %v3492_v17 = vpack.c.bf16 %v1611_v14, %v1608_v13  ;;  %3516 = vmatpush3.bf16.msra.mxu0 %v3515_v16  ;;  %v4365_v10 = vld [vmem:[#allocation5] ss:$0 sm:$0xff] }
 0xd46   :  { %3517 = vmatprep.subr.bf16.mxu0 %v3920_v0 }
 0xd47   :  { %v4298_v19 = vadd.f32 %v1531_v46, %v1307_v40  ;;  %v1586_v40 = vld [vmem:[#allocation11 + $0x228] sm:$0xff]  ;;  %v1607_v46 = vld [vmem:[#allocation11 + $0x2d0] sm:$0xff] }
 0xd48   :  { %v3478_v42 = vpack.c.bf16 %v1586_v40, %v1583_v39 }
 0xd49   :  { %1537 = vadd.xlane.f32.xlu0 %v4298_v19  ;;  %v1540_v20 = vmul.f32 %v4298_v19, %v4298_v19  ;;  %3519 = vmatpush3.bf16.msra.mxu0 %v3518_v24 }
 0xd4a   :  { %3479 = vmatpush1.bf16.msra.mxu1 %v3478_v42  ;;  %3520 = vmatprep.subr.bf16.mxu0 %v3920_v0 }
 0xd4b   :  { %3481 = vmatprep.subr.bf16.mxu1 %v3480_v47 }
 0xd4d   :  { %1541 = vadd.xlane.f32.xlu0 %v1540_v20  ;;  %v1610_v20 = vld [vmem:[#allocation11 + $0x2e8] sm:$0xff] }
 0xd4e   :  { %3483 = vmatpush1.bf16.msra.mxu1 %v3482_v55  ;;  %v3494_v23 = vpack.c.bf16 %v1610_v20, %v1607_v46 }
 0xd4f   :  { %3485 = vmatprep.subr.bf16.mxu1 %v3484_v60 }
 0xd52   :  { %3487 = vmatpush1.bf16.msra.mxu1 %v3486_v2 }
 0xd53   :  { %3489 = vmatprep.subr.bf16.mxu1 %v3488_v9 }
 0xd56   :  { %3491 = vmatpush1.bf16.msra.mxu1 %v3490_v15 }
 0xd57   :  { %3493 = vmatprep.subr.bf16.mxu1 %v3492_v17 }
 0xd5a   :  { %3495 = vmatpush1.bf16.msra.mxu1 %v3494_v23 }
 0xd5b   :  { %3239 = vmatprep.subr.mxu1 %v3922_v1 }
 0xdd6   :  { %v1538_v25 = vpop.xlane.xlu0 %1537 }
 0xdd7   :  { %v1539_v26 = vmul.f32 0.0078125, %v1538_v25 }
 0xdd9   :  { %v1544_v28 = vmul.f32 %v1539_v26, %v1539_v26  ;;  %v1546_v32 = vsub.f32 %v4298_v19, %v1539_v26  ;;  %v2882_v19 = vld [vmem:[%s4472_s6 + $0x3] sm:$0x7] }
 0xdda   :  { %v1542_v27 = vpop.xlane.xlu0 %1541  ;;  %v1623_v39 = vrot.slane %v2882_v19, %v4171_v50  ;;  %v1619_v42 = vrot.slane %v2882_v19, %v4177_v52  ;;  %v1627_v44 = vrot.slane %v2882_v19, %v350_v53 }
 0xddb   :  { %v1543_v29 = vmul.f32 0.0078125, %v1542_v27 }
 0xddd   :  { %v1545_v30 = vsub.f32 %v1543_v29, %v1544_v28 }
 0xddf   :  { %v1547_v31 = vadd.f32 1e-05, %v1545_v30 }
 0xde1   :  { %3650 = vrsqrt.f32 %v1547_v31 }
 0xdeb   :  { %v3651_v33 = vpop.eup %3650 }
 0xdec   :  { %v1549_v35 = vmul.f32 %v3651_v33, %v1546_v32 }
 0xdee   :  { %v1556_v37 = vmul.f32 %v2880_v34, %v1549_v35 }
 0xdf0   :  { %v4318_v38 = vadd.f32 %v2881_v36, %v1556_v37 }
 0xdf2   :  { %1696 = vmatmul.mubr.f32.vlgmr.msra.gmra.mrb[20].mxu1 %v4318_v38  ;;  %3237 = vmatmul.mubr.f32.vlgmr.msra.gmra.mrb[8].mxu0 %v4318_v38 }
 0xdf3   :  { %3241 = vmatprep.mubr.msk.f32.mxu1 %vm3921_vm0, %v3922_v1  ;;  %3311 = vmatprep.mubr.msk.f32.mxu0 %vm3921_vm0, %v3922_v1 }
 0xec5   :  { %v1697_v40 = vpop.f32.mrb[20].mxu1  ;;  %v1768_v41 = vpop.f32.mrb[8].mxu0 }
 0xec6   :  { %v1699_v43 = vpop.f32.mrb[21].mxu1  ;;  %v3238_v7 = vpop.f32.mrb[9].mxu0  ;;  %v4337_v47 = vadd.f32 %v1697_v40, %v1619_v42  ;;  %v4340_v48 = vadd.f32 %v1768_v41, %v1627_v44 }
 0xec7   :  { %v4333_v45 = vadd.f32 %v1699_v43, %v1623_v39 }
 0xec9   :  { %3240 = vmatpush3.xpose.msk.msra.mxu1 %vm172_vm1, %v4333_v45 }
 0xeca   :  { %3244 = vmatprep.subr.mxu1 %v3922_v1 }
 0xecc   :  { %3242 = vmatmul.mubr.msk.f32.vlgmr.msra.gmra.mrb[22].mxu1 %vm172_vm1, %v4337_v47 }
 0xecd   :  { %3245 = vmatpush3.msra.mxu1 %v4340_v48  ;;  %3246 = vmatprep.mubr.msk.f32.mxu1 %vm3921_vm0, %v3922_v1 }
 0xece   :  { %3249 = vmatprep.subr.mxu1 %v3922_v1 }
 0xf9f   :  { %v1844_v49 = vpop.f32.mrb[22].mxu1 }
 0xfa0   :  { %v1848_v53 = vmul.f32 0.17677669, %v1844_v49  ;;  %v3243_v51 = vpop.f32.mrb[23].mxu1 }
 0xfa2   :  { %v1849_v54 = vadd.f32 %v4199_v3, %v1848_v53 }
 0xfa4   :  { %v1850_v55 = vsel %vm580_vm2, %v1849_v54, -inf }
 0xfa5   :  { %1851 = vmax.xlane.f32.xlu0 %v1850_v55 }
 0xfbb   :  { %1936 = vrot.lane.b32.xlu0 %v4333_v45, %s3923_s25 }
0x1032   :  { %v1852_v56 = vpop.xlane.xlu0 %1851 }
0x1033   :  { %v1853_v57 = vsub.f32 %v1849_v54, %v1852_v56 }
0x1035   :  { %v1854_v58 = vmul.f32 1.442695, %v1853_v57 }
0x1036   :  { %v1937_v18 = vpop.permute.xlu0 %1936 }
0x1037   :  { %3652 = vpow2.f32 %v1854_v58 }
0x1041   :  { %v3653_v59 = vpop.eup %3652 }
0x1042   :  { %v1856_v60 = vsel %vm580_vm2, %v3653_v59, 0.0 }
0x1043   :  { %1857 = vadd.xlane.f32.xlu1 %v1856_v60 }
0x1054   :  { %1934 = vrot.lane.b32.xlu1 %v4337_v47, %s3923_s25 }
0x10d0   :  { %v1858_v61 = vpop.xlane.xlu1 %1857 }
0x10d1   :  { %3654 = vrcp.f32 %v1858_v61  ;;  %v2453_v61 = vld [vmem:[#allocation13 + $0x88] sm:$0xff] }
0x10d4   :  { %v1935_v2 = vpop.permute.xlu1 %1934 }
0x10db   :  { %v3655_v3 = vpop.eup %3654 }
0x10dc   :  { %v1860_v62 = vmul.f32 %v3655_v3, %v3653_v59  ;;  %v2454_v3 = vld [vmem:[#allocation13 + $0x90] sm:$0xff] }
0x10de   :  { %3247 = vmatmul.mubr.msk.f32.vlgmr.msra.gmra.mrb[24].mxu1 %vm580_vm2, %v1860_v62 }
0x10df   :  { %3250 = vmatpush3.xpose.msk.msra.mxu1 %vm172_vm1, %v1937_v18  ;;  %3251 = vmatprep.mubr.msk.f32.mxu1 %vm3921_vm0, %v3922_v1  ;;  %v2455_v18 = vld [vmem:[#allocation13 + $0x98] sm:$0xff] }
0x10e0   :  { %3254 = vmatprep.subr.mxu1 %v3922_v1 }
0x10e2   :  { %3252 = vmatmul.mubr.msk.f32.vlgmr.msra.gmra.mrb[26].mxu1 %vm172_vm1, %v1935_v2  ;;  %v3524_v2 = vpack.c.bf16 %v2455_v18, %v2454_v3  ;;  %v2597_v18 = vld [vmem:[#allocation14 + $0x190] sm:$0xff] }
0x10e3   :  { %3256 = vmatprep.mubr.msk.f32.mxu1 %vm3921_vm0, %v3922_v1 }
0x11b1   :  { %v4363_v4 = vpop.f32.mrb[24].mxu1 }
0x11b2   :  { %v3248_v5 = vpop.f32.mrb[25].mxu1 }
0x11b3   :  { %v2456_v5 = vld [vmem:[#allocation13 + $0xa0] sm:$0xff] }
0x11b5   :  { %v2008_v6 = vpop.f32.mrb[26].mxu1 }
0x11b6   :  { %v2012_v8 = vmul.f32 0.17677669, %v2008_v6  ;;  %v3253_v9 = vpop.f32.mrb[27].mxu1  ;;  %v2457_v6 = vld [vmem:[#allocation13 + $0xa8] sm:$0xff] }
0x11b7   :  { %v2458_v9 = vld [vmem:[#allocation13 + $0xb0] sm:$0xff] }
0x11b8   :  { %v2013_v11 = vadd.f32 %v4365_v10, %v2012_v8  ;;  %v3527_v8 = vpack.c.bf16 %v2457_v6, %v2456_v5  ;;  %v2602_v6 = vld [vmem:[#allocation14 + $0x1b8] sm:$0xff] }
0x11ba   :  { %v2014_v63 = vsel %vm580_vm2, %v2013_v11, -inf }
0x11bb   :  { %2015 = vmax.xlane.f32.xlu1 %v2014_v63  ;;  %v2461_v63 = vld [vmem:[#allocation13 + $0xc8] sm:$0xff] }
0x11cc   :  { %2104 = vrot.lane.b32.xlu1 %v4333_v45, %s3924_s20 }
0x11d0   :  { %2102 = vrot.lane.b32.xlu1 %v4337_v47, %s3924_s20 }
0x1248   :  { %v2016_v12 = vpop.xlane.xlu1 %2015 }
0x1249   :  { %v2017_v13 = vsub.f32 %v2013_v11, %v2016_v12 }
0x124b   :  { %v2018_v14 = vmul.f32 1.442695, %v2017_v13  ;;  %v2462_v13 = vld [vmem:[#allocation13 + $0xd0] sm:$0xff] }
0x124c   :  { %v2105_v21 = vpop.permute.xlu1 %2104 }
0x124d   :  { %3656 = vpow2.f32 %v2018_v14  ;;  %v2463_v14 = vld [vmem:[#allocation13 + $0xd8] sm:$0xff] }
0x1250   :  { %v2103_v23 = vpop.permute.xlu1 %2102 }
0x1257   :  { %v3657_v15 = vpop.eup %3656 }
0x1258   :  { %v2020_v16 = vsel %vm580_vm2, %v3657_v15, 0.0 }
0x1259   :  { %2021 = vadd.xlane.f32.xlu0 %v2020_v16  ;;  %v2464_v16 = vld [vmem:[#allocation13 + $0xe0] sm:$0xff] }
0x126f   :  { %2026 = vrot.lane.b32.xlu0 %v4340_v48, %s3923_s25 }
0x12e6   :  { %v2022_v17 = vpop.xlane.xlu0 %2021 }
0x12e7   :  { %3658 = vrcp.f32 %v2022_v17  ;;  %v2465_v17 = vld [vmem:[#allocation13 + $0xe8] sm:$0xff] }
0x12ea   :  { %v2027_v46 = vpop.permute.xlu0 %2026 }
0x12eb   :  { %3255 = vmatpush3.msra.mxu1 %v2027_v46  ;;  %v3539_v46 = vpack.c.bf16 %v2465_v17, %v2464_v16  ;;  %v2610_v16 = vld [vmem:[#allocation14 + $0x1f8] sm:$0xff] }
0x12ec   :  { %3259 = vmatprep.subr.mxu1 %v3922_v1 }
0x12f1   :  { %v3659_v20 = vpop.eup %3658 }
0x12f2   :  { %v2024_v22 = vmul.f32 %v3659_v20, %v3657_v15  ;;  %v3536_v15 = vpack.c.bf16 %v2463_v14, %v2462_v13  ;;  %v2466_v20 = vld [vmem:[#allocation13 + $0xf0] sm:$0xff]  ;;  %v2603_v13 = vld [vmem:[#allocation14 + $0x1c0] sm:$0xff] }
0x12f3   :  { %v2605_v14 = vld [vmem:[#allocation14 + $0x1d0] sm:$0xff] }
0x12f4   :  { %3257 = vmatmul.mubr.msk.f32.vlgmr.msra.gmra.mrb[28].mxu1 %vm580_vm2, %v2024_v22  ;;  %v3570_v17 = vpack.c.bf16 %v2605_v14, %v2603_v13  ;;  %v2710_v14 = vld [vmem:[#allocation16 + $0x160] sm:$0xff] }
0x12f5   :  { %3260 = vmatpush3.xpose.msk.msra.mxu1 %vm172_vm1, %v2105_v21  ;;  %3261 = vmatprep.mubr.msk.f32.mxu1 %vm3921_vm0, %v3922_v1  ;;  %v2467_v21 = vld [vmem:[#allocation13 + $0xf8] sm:$0xff] }
0x12f6   :  { %3264 = vmatprep.subr.mxu1 %v3922_v1  ;;  %v3542_v22 = vpack.c.bf16 %v2467_v21, %v2466_v20  ;;  %v2607_v20 = vld [vmem:[#allocation14 + $0x1e0] sm:$0xff]  ;;  %v2609_v21 = vld [vmem:[#allocation14 + $0x1f0] sm:$0xff] }
0x12f8   :  { %3262 = vmatmul.mubr.msk.f32.vlgmr.msra.gmra.mrb[30].mxu1 %vm172_vm1, %v2103_v23 }
0x12f9   :  { %3266 = vmatprep.mubr.msk.f32.mxu1 %vm3921_vm0, %v3922_v1 }
0x13c7   :  { %v2098_v24 = vpop.f32.mrb[28].mxu1 }
0x13c8   :  { %v3258_v25 = vpop.f32.mrb[29].mxu1 }
0x13cb   :  { %v2176_v26 = vpop.f32.mrb[30].mxu1 }
0x13cc   :  { %v2180_v27 = vmul.f32 0.17677669, %v2176_v26  ;;  %v3263_v28 = vpop.f32.mrb[31].mxu1 }
0x13ce   :  { %v2181_v29 = vadd.f32 %v4365_v10, %v2180_v27 }
0x13d0   :  { %v2182_v30 = vsel %vm580_vm2, %v2181_v29, -inf }
0x13d1   :  { %2183 = vmax.xlane.f32.xlu1 %v2182_v30 }
0x13e2   :  { %2271 = vrot.lane.b32.xlu1 %v4333_v45, %s3925_s19 }
0x13e6   :  { %2269 = vrot.lane.b32.xlu1 %v4337_v47, %s3925_s19 }
0x145e   :  { %v2184_v31 = vpop.xlane.xlu1 %2183 }
0x145f   :  { %v2185_v32 = vsub.f32 %v2181_v29, %v2184_v31  ;;  %v2580_v31 = vld [vmem:[#allocation14 + $0x108] sm:$0xff] }
0x1461   :  { %v2186_v33 = vmul.f32 1.442695, %v2185_v32  ;;  %v2582_v32 = vld [vmem:[#allocation14 + $0x118] sm:$0xff] }
0x1462   :  { %v2272_v39 = vpop.permute.xlu1 %2271 }
0x1463   :  { %3660 = vpow2.f32 %v2186_v33  ;;  %v2579_v33 = vld [vmem:[#allocation14 + $0x100] sm:$0xff] }
0x1466   :  { %v2270_v41 = vpop.permute.xlu1 %2269 }
0x146d   :  { %v3661_v34 = vpop.eup %3660 }
0x146e   :  { %v2188_v35 = vsel %vm580_vm2, %v3661_v34, 0.0 }
0x146f   :  { %2189 = vadd.xlane.f32.xlu0 %v2188_v35  ;;  %v2584_v35 = vld [vmem:[#allocation14 + $0x128] sm:$0xff] }
0x1485   :  { %2193 = vrot.lane.b32.xlu0 %v4340_v48, %s3924_s20 }
0x14fc   :  { %v2190_v36 = vpop.xlane.xlu0 %2189 }
0x14fd   :  { %3662 = vrcp.f32 %v2190_v36  ;;  %v2586_v36 = vld [vmem:[#allocation14 + $0x138] sm:$0xff] }
0x1500   :  { %v2194_v37 = vpop.permute.xlu0 %2193 }
0x1501   :  { %3265 = vmatpush3.msra.mxu1 %v2194_v37 }
0x1502   :  { %3269 = vmatprep.subr.mxu1 %v3922_v1 }
0x1507   :  { %v3663_v19 = vpop.eup %3662 }
0x1508   :  { %v2192_v40 = vmul.f32 %v3663_v19, %v3661_v34  ;;  %v2581_v34 = vld [vmem:[#allocation14 + $0x110] sm:$0xff]  ;;  %v3548_v19 = vpack.c.bf16 %v2586_v36, %v2584_v35 }
0x1509   :  { %v3546_v37 = vpack.c.bf16 %v2581_v34, %v2579_v33  ;;  %v2701_v33 = vld [vmem:[#allocation16 + $0x118] sm:$0xff]  ;;  %v2719_v34 = vld [vmem:[#allocation16 + $0x1a8] sm:$0xff] }
0x150a   :  { %3267 = vmatmul.mubr.msk.f32.vlgmr.msra.gmra.mrb[32].mxu1 %vm580_vm2, %v2192_v40  ;;  %v2585_v40 = vld [vmem:[#allocation14 + $0x130] sm:$0xff] }
0x150b   :  { %3270 = vmatpush3.xpose.msk.msra.mxu1 %vm172_vm1, %v2272_v39  ;;  %3271 = vmatprep.mubr.msk.f32.mxu1 %vm3921_vm0, %v3922_v1  ;;  %v2583_v39 = vld [vmem:[#allocation14 + $0x120] sm:$0xff] }
0x150c   :  { %3274 = vmatprep.subr.mxu1 %v3922_v1 }
0x150e   :  { %3272 = vmatmul.mubr.msk.f32.vlgmr.msra.gmra.mrb[34].mxu1 %vm172_vm1, %v2270_v41  ;;  %v2896_v41 = vld [vmem:[%s4474_s8 + $0x1] ss:$0 sm:$0xff] }
0x150f   :  { %3276 = vmatprep.mubr.msk.f32.mxu1 %vm3921_vm0, %v3922_v1 }
0x15dd   :  { %v2265_v42 = vpop.f32.mrb[32].mxu1 }
0x15de   :  { %v3268_v43 = vpop.f32.mrb[33].mxu1 }
0x15e1   :  { %v2343_v7 = vpop.f32.mrb[34].mxu1 }
0x15e2   :  { %v2347_v44 = vmul.f32 0.17677669, %v2343_v7  ;;  %v3273_v45 = vpop.f32.mrb[35].mxu1 }
0x15e4   :  { %v2348_v47 = vadd.f32 %v4365_v10, %v2347_v44  ;;  %v2459_v10 = vld [vmem:[#allocation13 + $0xb8] sm:$0xff] }
0x15e5   :  { %v3530_v11 = vpack.c.bf16 %v2459_v10, %v2458_v9  ;;  %v2601_v9 = vld [vmem:[#allocation14 + $0x1b0] sm:$0xff] }
0x15e6   :  { %v2349_v49 = vsel %vm580_vm2, %v2348_v47, -inf }
0x15e7   :  { %2350 = vmax.xlane.f32.xlu0 %v2349_v49  ;;  %v2590_v49 = vld [vmem:[#allocation14 + $0x158] sm:$0xff] }
0x15fd   :  { %2360 = vrot.lane.b32.xlu0 %v4340_v48, %s3925_s19  ;;  %v2452_v48 = vld [vmem:[#allocation13 + $0x80] sm:$0xff] }
0x15fe   :  { %v3521_v62 = vpack.c.bf16 %v2453_v61, %v2452_v48  ;;  %v2596_v48 = vld [vmem:[#allocation14 + $0x188] sm:$0xff]  ;;  %v2598_v61 = vld [vmem:[#allocation14 + $0x198] sm:$0xff] }
0x15ff   :  { %v3560_v3 = vpack.c.bf16 %v2598_v61, %v2596_v48 }
0x1600   :  { %3522 = vmatpush3.bf16.msra.mxu0 %v3521_v62  ;;  %v2595_v62 = vld [vmem:[#allocation14 + $0x180] sm:$0xff] }
0x1601   :  { %2441 = vrot.lane.b32.xlu0 %v2265_v42, %s3924_s20  ;;  %3523 = vmatprep.subr.bf16.mxu0 %v3920_v0  ;;  %v3562_v5 = vpack.c.bf16 %v2597_v18, %v2595_v62 }
0x1604   :  { %3525 = vmatpush3.bf16.msra.mxu0 %v3524_v2  ;;  %v2600_v2 = vld [vmem:[#allocation14 + $0x1a8] sm:$0xff] }
0x1605   :  { %3526 = vmatprep.subr.bf16.mxu0 %v3920_v0  ;;  %v3564_v10 = vpack.c.bf16 %v2602_v6, %v2600_v2 }
0x1608   :  { %3528 = vmatpush3.bf16.msra.mxu0 %v3527_v8  ;;  %v2599_v8 = vld [vmem:[#allocation14 + $0x1a0] sm:$0xff] }
0x1609   :  { %3529 = vmatprep.subr.bf16.mxu0 %v3920_v0 }
0x160c   :  { %3531 = vmatpush3.bf16.msra.mxu0 %v3530_v11  ;;  %v2604_v11 = vld [vmem:[#allocation14 + $0x1c8] sm:$0xff] }
0x160d   :  { %3532 = vmatprep.subr.bf16.mxu0 %v3920_v0 }
0x1674   :  { %v2351_v53 = vpop.xlane.xlu0 %2350 }
0x1675   :  { %v2352_v51 = vsub.f32 %v2348_v47, %v2351_v53  ;;  %v2588_v47 = vld [vmem:[#allocation14 + $0x148] sm:$0xff] }
0x1676   :  { %v3552_v53 = vpack.c.bf16 %v2590_v49, %v2588_v47 }
0x1677   :  { %v2353_v54 = vmul.f32 1.442695, %v2352_v51  ;;  %v2587_v51 = vld [vmem:[#allocation14 + $0x140] sm:$0xff] }
0x1678   :  { %v2361_v55 = vpop.permute.xlu0 %2360 }
0x1679   :  { %3664 = vpow2.f32 %v2353_v54  ;;  %3275 = vmatpush3.msra.mxu1 %v2361_v55  ;;  %v2589_v54 = vld [vmem:[#allocation14 + $0x150] sm:$0xff] }
0x167a   :  { %v3554_v55 = vpack.c.bf16 %v2589_v54, %v2587_v51  ;;  %v2707_v51 = vld [vmem:[#allocation16 + $0x148] sm:$0xff]  ;;  %v2724_v54 = vld [vmem:[#allocation16 + $0x1d0] sm:$0xff] }
0x167c   :  { %v2442_v27 = vpop.permute.xlu0 %2441 }
0x1683   :  { %v3665_v56 = vpop.eup %3664 }
0x1684   :  { %v2355_v57 = vsel %vm580_vm2, %v3665_v56, 0.0 }
0x1685   :  { %2356 = vadd.xlane.f32.xlu1 %v2355_v57  ;;  %v2594_v57 = vld [vmem:[#allocation14 + $0x178] sm:$0xff] }
0x1696   :  { %2437 = vrot.lane.b32.xlu1 %v2098_v24, %s3925_s19 }
0x1712   :  { %v2357_v58 = vpop.xlane.xlu1 %2356 }
0x1713   :  { %3666 = vrcp.f32 %v2357_v58 }
0x1716   :  { %v2438_v25 = vpop.permute.xlu1 %2437 }
0x1717   :  { %v2448_v26 = vsel %vm172_vm1, %v4363_v4, %v2438_v25  ;;  %v3550_v4 = vpack.c.bf16 %v2585_v40, %v2583_v39  ;;  %v2698_v25 = vld [vmem:[#allocation16 + $0x100] sm:$0xff]  ;;  %v2720_v39 = vld [vmem:[#allocation16 + $0x1b0] sm:$0xff]  ;;  %v2721_v40 = vld [vmem:[#allocation16 + $0x1b8] sm:$0xff] }
0x1718   :  { %v2449_v28 = vsel %vm1180_vm3, %v2448_v26, %v2442_v27  ;;  %v2699_v27 = vld [vmem:[#allocation16 + $0x108] sm:$0xff] }
0x171d   :  { %v3667_v59 = vpop.eup %3666 }
0x171e   :  { %v2359_v60 = vmul.f32 %v3667_v59, %v3665_v56  ;;  %v2592_v56 = vld [vmem:[#allocation14 + $0x168] sm:$0xff]  ;;  %v2591_v59 = vld [vmem:[#allocation14 + $0x160] sm:$0xff] }
0x171f   :  { %v3556_v58 = vpack.c.bf16 %v2594_v57, %v2592_v56 }
0x1720   :  { %3277 = vmatmul.mubr.msk.f32.vlgmr.msra.gmra.mrb[36].mxu1 %vm580_vm2, %v2359_v60 }
0x1721   :  { %2688 = vmatprep.mubr.f32.mxu1 %v3922_v1  ;;  %v2460_v1 = vld [vmem:[#allocation13 + $0xc0] sm:$0xff] }
0x1722   :  { %v3533_v12 = vpack.c.bf16 %v2461_v63, %v2460_v1  ;;  %v2606_v1 = vld [vmem:[#allocation14 + $0x1d8] sm:$0xff]  ;;  %v3566_v63 = vpack.c.bf16 %v2601_v9, %v2599_v8 }
0x1724   :  { %3534 = vmatpush3.bf16.msra.mxu0 %v3533_v12  ;;  %v3568_v12 = vpack.c.bf16 %v2606_v1, %v2604_v11  ;;  %v2899_v11 = vld [vmem:[%s4475_s9 + $0x1] ss:$0 sm:$0xff] }
0x1725   :  { %3535 = vmatprep.subr.bf16.mxu0 %v3920_v0 }
0x1728   :  { %3537 = vmatpush3.bf16.msra.mxu0 %v3536_v15  ;;  %v2608_v15 = vld [vmem:[#allocation14 + $0x1e8] sm:$0xff] }
0x1729   :  { %3538 = vmatprep.subr.bf16.mxu0 %v3920_v0 }
0x172c   :  { %3540 = vmatpush3.bf16.msra.mxu0 %v3539_v46  ;;  %v3572_v46 = vpack.c.bf16 %v2610_v16, %v2608_v15  ;;  %v2711_v15 = vld [vmem:[#allocation16 + $0x168] sm:$0xff] }
0x172d   :  { %3541 = vmatprep.subr.bf16.mxu0 %v3920_v0  ;;  %v3544_v0 = vpack.c.bf16 %v2582_v32, %v2580_v31  ;;  %v2700_v32 = vld [vmem:[#allocation16 + $0x110] sm:$0xff]  ;;  %v3602_v16 = vpack.c.bf16 %v2711_v15, %v2710_v14 }
0x172e   :  { %v3582_v35 = vpack.c.bf16 %v2701_v33, %v2700_v32  ;;  %v2903_v33 = vld [vmem:[%s4480_s14 + $0x1] ss:$0 sm:$0xff] }
0x172f   :  { %3545 = vmatprep.subr.bf16.mxu1 %v3544_v0  ;;  %v2718_v0 = vld [vmem:[#allocation16 + $0x1a0] sm:$0xff] }
0x1730   :  { %3543 = vmatpush3.bf16.msra.mxu0 %v3542_v22  ;;  %3547 = vmatpush1.bf16.msra.mxu1 %v3546_v37  ;;  %v3574_v22 = vpack.c.bf16 %v2609_v21, %v2607_v20  ;;  %v3584_v36 = vpack.c.bf16 %v2719_v34, %v2718_v0  ;;  %v2702_v37 = vld [vmem:[#allocation16 + $0x120] sm:$0xff]  ;;  %v2712_v20 = vld [vmem:[#allocation16 + $0x170] sm:$0xff]  ;;  %v2713_v21 = vld [vmem:[#allocation16 + $0x178] sm:$0xff] }
0x1731   :  { %3549 = vmatprep.subr.bf16.mxu1 %v3548_v19  ;;  %v2703_v19 = vld [vmem:[#allocation16 + $0x128] sm:$0xff] }
0x1734   :  { %3551 = vmatpush1.bf16.msra.mxu1 %v3550_v4  ;;  %v3586_v4 = vpack.c.bf16 %v2703_v19, %v2702_v37 }
0x1735   :  { %3553 = vmatprep.subr.bf16.mxu1 %v3552_v53  ;;  %v2706_v53 = vld [vmem:[#allocation16 + $0x140] sm:$0xff] }
0x1736   :  { %v3594_v56 = vpack.c.bf16 %v2707_v51, %v2706_v53 }
0x1738   :  { %3555 = vmatpush1.bf16.msra.mxu1 %v3554_v55  ;;  %v2725_v55 = vld [vmem:[#allocation16 + $0x1d8] sm:$0xff] }
0x1739   :  { %3557 = vmatprep.subr.bf16.mxu1 %v3556_v58  ;;  %v3596_v57 = vpack.c.bf16 %v2725_v55, %v2724_v54  ;;  %v2708_v58 = vld [vmem:[#allocation16 + $0x150] sm:$0xff] }
0x17f3   :  { %v2432_v23 = vpop.f32.mrb[36].mxu1 }
0x17f4   :  { %2445 = vrot.lane.b32.xlu1 %v2432_v23, %s3923_s25  ;;  %v3278_v24 = vpop.f32.mrb[37].mxu1  ;;  %v2714_v23 = vld [vmem:[#allocation16 + $0x180] sm:$0xff] }
0x17f5   :  { %v2715_v24 = vld [vmem:[#allocation16 + $0x188] sm:$0xff] }
0x17f6   :  { %v3576_v26 = vpack.c.bf16 %v2715_v24, %v2714_v23  ;;  %v2901_v23 = vld [vmem:[%s4478_s12 + $0x2] sm:$0x3] }
0x17f7   :  { %v2617_v24 = vrot.slane %v2901_v23, %v4177_v52 }
0x17f8   :  { %3577 = vmatprep.subr.bf16.mxu0 %v3576_v26 }
0x1866   :  { %v2446_v29 = vpop.permute.xlu1 %2445 }
0x1867   :  { %v2450_v30 = vsel %vm1182_vm4, %v2449_v28, %v2446_v29  ;;  %v2716_v28 = vld [vmem:[#allocation16 + $0x190] sm:$0xff]  ;;  %v2717_v29 = vld [vmem:[#allocation16 + $0x198] sm:$0xff] }
0x1868   :  { %3312 = vmatmul.mubr.f32.vlgmr.msra.gmra.mrb[10].mxu0 %v2450_v30  ;;  %v3578_v30 = vpack.c.bf16 %v2699_v27, %v2698_v25  ;;  %v3580_v31 = vpack.c.bf16 %v2717_v29, %v2716_v28  ;;  %v2621_v25 = vrot.slane %v2901_v23, %v4171_v50 }
0x186a   :  { %3579 = vmatpush3.bf16.msra.mxu0 %v3578_v30 }
0x186b   :  { %3581 = vmatprep.subr.bf16.mxu0 %v3580_v31 }
0x186e   :  { %3583 = vmatpush3.bf16.msra.mxu0 %v3582_v35 }
0x186f   :  { %3585 = vmatprep.subr.bf16.mxu0 %v3584_v36 }
0x1872   :  { %3587 = vmatpush3.bf16.msra.mxu0 %v3586_v4 }
0x193b   :  { %v2542_v42 = vpop.f32.mrb[10].mxu0 }
0x193c   :  { %v2543_v43 = vadd.f32 %v2896_v41, %v2542_v42  ;;  %v3313_v7 = vpop.f32.mrb[11].mxu0  ;;  %v3588_v41 = vpack.c.bf16 %v2721_v40, %v2720_v39  ;;  %v2704_v42 = vld [vmem:[#allocation16 + $0x130] sm:$0xff] }
0x193d   :  { %v2722_v7 = vld [vmem:[#allocation16 + $0x1c0] sm:$0xff] }
0x193e   :  { %v4428_v44 = vadd.f32 %v2543_v43, %v4318_v38  ;;  %v2593_v38 = vld [vmem:[#allocation14 + $0x170] sm:$0xff]  ;;  %v2705_v43 = vld [vmem:[#allocation16 + $0x138] sm:$0xff]  ;;  %3589 = vmatprep.subr.bf16.mxu0 %v3588_v41 }
0x193f   :  { %v3558_v60 = vpack.c.bf16 %v2593_v38, %v2591_v59  ;;  %v3590_v47 = vpack.c.bf16 %v2705_v43, %v2704_v42  ;;  %v2709_v59 = vld [vmem:[#allocation16 + $0x158] sm:$0xff]  ;;  %v2726_v38 = vld [vmem:[#allocation16 + $0x1e0] sm:$0xff] }
0x1940   :  { %2551 = vadd.xlane.f32.xlu0 %v4428_v44  ;;  %v2554_v45 = vmul.f32 %v4428_v44, %v4428_v44  ;;  %v3598_v48 = vpack.c.bf16 %v2709_v59, %v2708_v58 }
0x1941   :  { %3559 = vmatpush1.bf16.msra.mxu1 %v3558_v60  ;;  %3591 = vmatpush3.bf16.msra.mxu0 %v3590_v47  ;;  %v2727_v60 = vld [vmem:[#allocation16 + $0x1e8] sm:$0xff]  ;;  %v2907_v47 = vld [vmem:[%s4482_s16 + $0x1] ss:$0 sm:$0xff] }
0x1942   :  { %2555 = vadd.xlane.f32.xlu1 %v2554_v45  ;;  %3561 = vmatprep.subr.bf16.mxu1 %v3560_v3  ;;  %v2723_v45 = vld [vmem:[#allocation16 + $0x1c8] sm:$0xff]  ;;  %v3600_v61 = vpack.c.bf16 %v2727_v60, %v2726_v38 }
0x1943   :  { %v3592_v49 = vpack.c.bf16 %v2723_v45, %v2722_v7  ;;  %v2906_v7 = vld [vmem:[%s4481_s15 + $0x1] ss:$0 sm:$0xff] }
0x1945   :  { %3563 = vmatpush1.bf16.msra.mxu1 %v3562_v5  ;;  %3593 = vmatprep.subr.bf16.mxu0 %v3592_v49 }
0x1946   :  { %3565 = vmatprep.subr.bf16.mxu1 %v3564_v10  ;;  %3595 = vmatpush3.bf16.msra.mxu0 %v3594_v56 }
0x1947   :  { %3597 = vmatprep.subr.bf16.mxu0 %v3596_v57 }
0x1949   :  { %3567 = vmatpush1.bf16.msra.mxu1 %v3566_v63  ;;  %v2900_v63 = vld [vmem:[%s4476_s10 + $0x1] ss:$0 sm:$0xff] }
0x194a   :  { %3569 = vmatprep.subr.bf16.mxu1 %v3568_v12  ;;  %3599 = vmatpush3.bf16.msra.mxu0 %v3598_v48 }
0x194b   :  { %3601 = vmatprep.subr.bf16.mxu0 %v3600_v61 }
0x194d   :  { %3571 = vmatpush1.bf16.msra.mxu1 %v3570_v17  ;;  %v2728_v17 = vld [vmem:[#allocation16 + $0x1f0] sm:$0xff] }
0x194e   :  { %3573 = vmatprep.subr.bf16.mxu1 %v3572_v46  ;;  %3603 = vmatpush3.bf16.msra.mxu0 %v3602_v16  ;;  %v2729_v46 = vld [vmem:[#allocation16 + $0x1f8] sm:$0xff] }
0x1951   :  { %3575 = vmatpush1.bf16.msra.mxu1 %v3574_v22  ;;  %v3606_v22 = vpack.c.bf16 %v2713_v21, %v2712_v20 }
0x19cd   :  { %v2552_v3 = vpop.xlane.xlu0 %2551 }
0x19ce   :  { %v2553_v62 = vmul.f32 0.0078125, %v2552_v3 }
0x19cf   :  { %v2556_v18 = vpop.xlane.xlu1 %2555 }
0x19d0   :  { %v2558_v2 = vmul.f32 %v2553_v62, %v2553_v62  ;;  %v2557_v5 = vmul.f32 0.0078125, %v2556_v18  ;;  %v2560_v9 = vsub.f32 %v4428_v44, %v2553_v62  ;;  %v3604_v44 = vpack.c.bf16 %v2729_v46, %v2728_v17 }
0x19d2   :  { %v2559_v6 = vsub.f32 %v2557_v5, %v2558_v2  ;;  %3605 = vmatprep.subr.bf16.mxu0 %v3604_v44 }
0x19d3   :  { %3607 = vmatpush3.bf16.msra.mxu0 %v3606_v22 }
0x19d4   :  { %v2561_v8 = vadd.f32 1e-05, %v2559_v6 }
0x19d6   :  { %3668 = vrsqrt.f32 %v2561_v8 }
0x19e0   :  { %v3669_v10 = vpop.eup %3668 }
0x19e1   :  { %v2563_v1 = vmul.f32 %v3669_v10, %v2560_v9 }
0x19e3   :  { %v2570_v12 = vmul.f32 %v2899_v11, %v2563_v1 }
0x19e5   :  { %v2577_v13 = vadd.f32 %v2900_v63, %v2570_v12 }
0x19e7   :  { %2689 = vmatmul.mubr.f32.vlgmr.msra.gmra.mrb[38].mxu1 %v2577_v13 }
0x1aba   :  { %v2690_v26 = vpop.f32.mrb[38].mxu1 }
0x1abb   :  { %v2691_v27 = vadd.f32 %v2690_v26, %v2617_v24  ;;  %v2692_v28 = vpop.f32.mrb[39].mxu1 }
0x1abc   :  { %v2693_v29 = vadd.f32 %v2692_v28, %v2621_v25 }
0x1abd   :  { %v2695_v31 = vmax.f32 %v2691_v27, 0.0 }
0x1abe   :  { %v2696_v30 = vmax.f32 %v2693_v29, 0.0 }
0x1ac0   :  { %2802 = vmatprep.mubr.f32.mxu0 %v2696_v30 }
0x1ac1   :  { %2803 = vmatmul.mubr.f32.vlgmr.msra.gmra.mrb[12].mxu0 %v2695_v31 }
0x1b94   :  { %v3080_v32 = vpop.f32.mrb[12].mxu0 }
0x1b95   :  { %v3081_v0 = vpop.f32.mrb[13].mxu0 }
0x1b96   :  { %v3082_v34 = vadd.f32 %v3081_v0, %v3080_v32 }
0x1b98   :  { %v2805_v35 = vadd.f32 %v3082_v34, %v2903_v33 }
0x1b9a   :  { %v2808_v36 = vadd.f32 %v2805_v35, %v2577_v13 }
0x1b9c   :  { %2813 = vadd.xlane.f32.xlu0 %v2808_v36  ;;  %v2816_v52 = vmul.f32 %v2808_v36, %v2808_v36 }
0x1ba0   :  { %2817 = vadd.xlane.f32.xlu0 %v2816_v52 }
0x1c29   :  { %v2814_v50 = vpop.xlane.xlu0 %2813 }
0x1c2a   :  { %v2815_v37 = vmul.f32 0.0078125, %v2814_v50 }
0x1c2c   :  { %v2820_v39 = vmul.f32 %v2815_v37, %v2815_v37  ;;  %v2822_v42 = vsub.f32 %v2808_v36, %v2815_v37 }
0x1c2d   :  { %v2818_v19 = vpop.xlane.xlu0 %2817 }
0x1c2e   :  { %v2819_v40 = vmul.f32 0.0078125, %v2818_v19 }
0x1c30   :  { %v2821_v4 = vsub.f32 %v2819_v40, %v2820_v39 }
0x1c32   :  { %v2823_v41 = vadd.f32 1e-05, %v2821_v4 }
0x1c34   :  { %3670 = vrsqrt.f32 %v2823_v41 }
0x1c3e   :  { %v3671_v43 = vpop.eup %3670 }
0x1c3f   :  { %v2825_v45 = vmul.f32 %v3671_v43, %v2822_v42 }
0x1c41   :  { %v2832_v49 = vmul.f32 %v2906_v7, %v2825_v45 }
0x1c43   :  { %v2839_v53 = vadd.f32 %v2907_v47, %v2832_v49 }
0x1c45   :  { %2840 = vst [vmem:[#allocation17] sm:$0xff] %v2839_v53 }
0x1c46   :  { %3882 = shalt.err (!%p3879_p6)
}
0x1c47   :  { %s3883_s1 = scalar_lea.hbm %s4483_s17, 128 }
0x1c48   :  { %p3884_p7 = scmp.ne.s32.totalorder %s4483_s17, %s3883_s1  ;;  %p3887_p8 = scmp.lt.u32.totalorder %s3883_s1, %s4483_s17 }
0x1c4a   :  { %p3889_p9 = pnand %p3887_p8, %p3884_p7 }
0x1c4c   :  { %3892 = shalt.err (!%p3889_p9)
}
0x1c4d   :  { %2850 = dma.vmem_to_hbm [thread:$0]  %s2848_s23, 128, %s4483_s17, [#allocation4]  }
0x1c4e   :  { %3903 = dma.done.wait [#allocation4], 128  }
0x1c4f   :  { %3904 = vsyncadd [#allocation4], 4294967168 }
0x1c50   :  { %2854 = vsyncpa [#allocation3], 1 }
0x1c51   :  { %2855 = vsyncpa [#allocation6], 1 }
0x1c52   :  { %2856 = vsyncpa [#allocation9], 1 }
0x1c53   :  { %2857 = vsyncpa [#allocation12], 1 }
0x1c54   :  { %2858 = vsyncpa [#allocation15], 1 }
0x1c55   :  { %2859 = vsyncpa [#allocation4], 1 }

</bundles_post_ra>
